<compile_context>
chip_gen: v7x
topology: tpu7x:2x2x1
jax: 0.10.0
libtpu: 0.0.40
codegen_flags: <defaults>
</compile_context>

<pallas_src>
import math
import functools

import jax
import jax.numpy as jnp
from jax.experimental import pallas as pl
from jax.experimental.pallas import tpu as pltpu


# ------------------------------- small helpers -------------------------------

def _vmem_limit_bytes(frac=0.85):
    """Per-generation VMEM budget: ~109 MiB on v5e/v6e (128 MiB), ~54 MiB on v7x (64 MiB)."""
    cap = 128 * 1024 * 1024
    try:
        cap = getattr(pltpu.get_tpu_info(), "vmem_capacity_bytes", cap)
    except Exception:
        pass
    return int(cap * frac)


def _layer_norm(x, gamma, beta, eps=1e-5):
    mu = jnp.mean(x, axis=-1, keepdims=True)
    var = jnp.mean((x - mu) ** 2, axis=-1, keepdims=True)
    return (x - mu) * jax.lax.rsqrt(var + eps) * gamma + beta


def _pick_ff_chunk(F, target=512):
    if F <= target or F % 128 != 0:
        return F
    c = (target // 128) * 128
    while F % c != 0:
        c -= 128
    return c


# ------------------------ fused encoder stack kernel -------------------------
# grid = (B // bb, N_layers); residual carried in VMEM scratch across the layer axis.

def encoder_stack_kernel(x_ref, maskb_ref,
                         wqkv_ref, wo_ref, wff1_ref, wff2_ref,
                         vec_ref, bff1_ref,
                         o_ref, act_ref, *, num_heads, ff_chunk):
    l = pl.program_id(1)

    # Load the (bf16) embedding+PE input into the f32 residual carry at layer 0.
    @pl.when(l == 0)
    def _():
        act_ref[...] = x_ref[...].astype(jnp.float32)

    bb, S, D = act_ref.shape
    H = num_heads
    dh = D // H
    F = wff1_ref.shape[-1]
    n_ch = F // ff_chunk

    vec = vec_ref[0]                       # (9, D) f32: [bq*scale, bk, bv, bo, g1, b1, bff2, g2, b2]

    def vrow(i):                           # (1, D) f32 row, broadcast-friendly
        return vec[i:i + 1]

    wqkv = wqkv_ref[0]                     # (D, 3D) bf16, scale folded into Q columns
    wo = wo_ref[0]                         # (D, D)  bf16
    w1 = wff1_ref.at[0]                    # Ref view (D, F) bf16
    w2 = wff2_ref.at[0]                    # Ref view (F, D) bf16
    b1 = bff1_ref.at[0]                    # Ref view (1, F) f32

    for bi in range(bb):
        x = act_ref[bi]                    # (S, D) f32 residual stream
        mask_bias = maskb_ref[bi]          # (1, S) additive key-padding bias

        # --- multi-head self attention (post-norm, TransformerEncoderLayer defaults) ---
        xb = x.astype(jnp.bfloat16)
        qkv = jnp.dot(xb, wqkv, preferred_element_type=jnp.float32)      # (S, 3D) lane-dense
        q = qkv[:, 0:D] + vrow(0)                                        # scale already folded
        k = qkv[:, D:2 * D] + vrow(1)
        v = qkv[:, 2 * D:3 * D] + vrow(2)

        ctx_parts = []
        for h in range(H):
            lo = h * dh
            qh = q[:, lo:lo + dh].astype(jnp.bfloat16)                   # (S, dh)
            kh = k[:, lo:lo + dh].astype(jnp.bfloat16)
            vh = v[:, lo:lo + dh].astype(jnp.bfloat16)
            s = jnp.einsum('qe,ke->qk', qh, kh,
                           preferred_element_type=jnp.float32) + mask_bias  # (S, S)
            m = jnp.max(s, axis=-1, keepdims=True)
            e = jnp.exp(s - m)
            p = e * pl.reciprocal(jnp.sum(e, axis=-1, keepdims=True), approx=True)
            ctx_parts.append(jnp.dot(p.astype(jnp.bfloat16), vh,
                                     preferred_element_type=jnp.float32))   # (S, dh)
        ctx = jnp.concatenate(ctx_parts, axis=-1).astype(jnp.bfloat16)       # (S, D)
        attn = jnp.dot(ctx, wo, preferred_element_type=jnp.float32) + vrow(3)

        x1 = _layer_norm(x + attn, vrow(4), vrow(5))

        # --- feed forward (ReLU, dim_feedforward = 4*D), chunked over the 4D axis ---
        x1b = x1.astype(jnp.bfloat16)
        h2 = None
        for c in range(n_ch):
            off = c * ff_chunk
            w1c = w1[:, pl.ds(off, ff_chunk)]                             # (D, fc) bf16
            b1c = b1[:, pl.ds(off, ff_chunk)]                             # (1, fc) f32
            w2c = w2[pl.ds(off, ff_chunk), :]                             # (fc, D) bf16
            h1c = jnp.maximum(
                jnp.dot(x1b, w1c, preferred_element_type=jnp.float32) + b1c, 0.0)
            part = jnp.dot(h1c.astype(jnp.bfloat16), w2c,
                           preferred_element_type=jnp.float32)
            h2 = part if h2 is None else h2 + part
        h2 = h2 + vrow(6)

        x2 = _layer_norm(x1 + h2, vrow(7), vrow(8))
        act_ref[bi] = x2

    @pl.when(l == pl.num_programs(1) - 1)
    def _():
        o_ref[...] = act_ref[...].astype(o_ref.dtype)


def encoder_stack(x, mask_bias, layers, num_heads):
    B, S, D = x.shape
    N = layers["w_qkv"].shape[0]
    F = layers["w_ff1"].shape[-1]

    # batch blocking: amortize per-layer weight streaming over several sequences
    bb = 1
    for cand in (4, 2):
        if B % cand == 0:
            bb = cand
            break

    ff_chunk = _pick_ff_chunk(F)
    kernel = functools.partial(encoder_stack_kernel, num_heads=num_heads, ff_chunk=ff_chunk)

    names = ("w_qkv", "w_o", "w_ff1", "w_ff2", "vecs", "b_ff1")
    weights = [layers[n] for n in names]

    def wspec(arr):
        rest = arr.shape[1:]
        nd = len(rest)
        return pl.BlockSpec((1,) + rest, lambda b, l, _nd=nd: (l,) + (0,) * _nd)

    return pl.pallas_call(
        kernel,
        out_shape=jax.ShapeDtypeStruct((B, S, D), jnp.bfloat16),
        grid=(B // bb, N),
        in_specs=[
            pl.BlockSpec((bb, S, D), lambda b, l: (b, 0, 0)),
            pl.BlockSpec((bb, 1, S), lambda b, l: (b, 0, 0)),
        ] + [wspec(w) for w in weights],
        out_specs=pl.BlockSpec((bb, S, D), lambda b, l: (b, 0, 0)),
        scratch_shapes=[pltpu.VMEM((bb, S, D), jnp.float32)],
        compiler_params=pltpu.CompilerParams(
            dimension_semantics=("parallel", "arbitrary"),
            vmem_limit_bytes=_vmem_limit_bytes()),
    )(x, mask_bias, *weights)


# ----------------------------- final linear kernel ---------------------------
# grid = (nv,): flattened (B*S, D) activation resident, vocab-weight tile streamed once.

def vocab_proj_kernel(x_ref, w_ref, b_ref, o_ref):
    acc = jnp.dot(x_ref[...], w_ref[...], preferred_element_type=jnp.float32) + b_ref[...]
    o_ref[...] = acc.astype(o_ref.dtype)


def final_linear(x, w_t, b, out_dtype=jnp.float32):
    B, S, D = x.shape
    V = w_t.shape[1]
    M = B * S

    v128 = ((V + 127) // 128) * 128
    tile_v = min(2048, v128)
    v_pad = ((V + tile_v - 1) // tile_v) * tile_v
    if v_pad != V:
        w_t = jnp.pad(w_t, ((0, 0), (0, v_pad - V)))
        b = jnp.pad(b, ((0, 0), (0, v_pad - V)))
    nv = v_pad // tile_v

    x2 = x.reshape(M, D)
    out = pl.pallas_call(
        vocab_proj_kernel,
        out_shape=jax.ShapeDtypeStruct((M, v_pad), out_dtype),
        grid=(nv,),
        in_specs=[
            pl.BlockSpec((M, D), lambda vi: (0, 0)),          # resident activation
            pl.BlockSpec((D, tile_v), lambda vi: (0, vi)),    # streamed weight tile
            pl.BlockSpec((1, tile_v), lambda vi: (0, vi)),
        ],
        out_specs=pl.BlockSpec((M, tile_v), lambda vi: (0, vi)),
        compiler_params=pltpu.CompilerParams(
            dimension_semantics=("parallel",),
            vmem_limit_bytes=_vmem_limit_bytes()),
    )(x2, w_t, b)

    out = out.reshape(B, S, v_pad)
    return out[:, :, :V] if v_pad != V else out


# ------------------------------ parameter setup ------------------------------

def sinusoidal_pe(window_size, d_model):
    position = jnp.arange(window_size, dtype=jnp.float32)[:, None]
    div_term = jnp.exp(jnp.arange(0, d_model, 2, dtype=jnp.float32)
                       * (-math.log(10000.0) / d_model))
    pe = jnp.zeros((window_size, d_model), jnp.float32)
    pe = pe.at[:, 0::2].set(jnp.sin(position * div_term))
    pe = pe.at[:, 1::2].set(jnp.cos(position * div_term))
    return pe


def init_params(key, num_words, seq_len, d_model, n_layers, num_heads):
    dh = d_model // num_heads
    scale = 1.0 / math.sqrt(dh)

    def nrm(k, shape, std=0.02):
        return std * jax.random.normal(k, shape, jnp.float32)

    k = jax.random.split(key, 8)
    wq = nrm(k[2], (n_layers, d_model, d_model))
    wk = nrm(k[3], (n_layers, d_model, d_model))
    wv = nrm(k[4], (n_layers, d_model, d_model))

    # Fused QKV weight, attention scale folded into the Q columns.
    w_qkv = jnp.concatenate([wq * scale, wk, wv], axis=-1).astype(jnp.bfloat16)

    # Packed small per-layer vectors (one DMA per layer step):
    # rows: [bq*scale, bk, bv, bo, ln1_g, ln1_b, bff2, ln2_g, ln2_b]
    vecs = jnp.zeros((n_layers, 9, d_model), jnp.float32)
    vecs = vecs.at[:, 4].set(1.0)   # ln1 gamma
    vecs = vecs.at[:, 7].set(1.0)   # ln2 gamma

    layers = {
        "w_qkv": w_qkv,                                                    # (N, D, 3D) bf16
        "w_o":   nrm(k[5], (n_layers, d_model, d_model)).astype(jnp.bfloat16),
        "w_ff1": nrm(k[6], (n_layers, d_model, 4 * d_model)).astype(jnp.bfloat16),
        "w_ff2": nrm(k[7], (n_layers, 4 * d_model, d_model)).astype(jnp.bfloat16),
        "vecs":  vecs,                                                     # (N, 9, D) f32
        "b_ff1": jnp.zeros((n_layers, 1, 4 * d_model), jnp.float32),
    }
    return {
        "embedding": jax.random.normal(k[0], (num_words, d_model), jnp.float32),
        "pe": sinusoidal_pe(seq_len, d_model),
        "w_out_t": nrm(k[1], (d_model, num_words)).astype(jnp.bfloat16),   # (D, V)
        "b_out": jnp.zeros((1, num_words), jnp.float32),
        "layers": layers,
    }


# --------------------------------- forward -----------------------------------

def bert_forward(tokens, mask, params, num_heads):
    # embedding lookup + (identity) dropout + sinusoidal positional encoding
    # (gather done by XLA outside the kernels).
    emb = jnp.take(params["embedding"], tokens, axis=0)                      # (B, S, D)
    x = (emb + params["pe"][None, :tokens.shape[1], :]).astype(jnp.bfloat16)
    # src_key_padding_mask: True = pad -> additive -inf bias on keys
    mask_bias = jnp.where(mask, -1e9, 0.0).astype(jnp.float32)[:, None, :]   # (B, 1, S)
    x = encoder_stack(x, mask_bias, params["layers"], num_heads)             # (B, S, D) bf16
    logits = final_linear(x, params["w_out_t"], params["b_out"])             # (B, S, V) f32
    return logits


# ----------------------------------- main -------------------------------------

if __name__ == "__main__":
    # NOTE: toy shapes for correctness only; perf conclusions need lane dims >= 128.
    B, S, V, D, H, N = 2, 8, 64, 32, 4, 2  # batch, seq_len, num_words, d_model, heads, layers

    key = jax.random.PRNGKey(0)
    pkey, tkey = jax.random.split(key)
    params = init_params(pkey, V, S, D, N, H)

    tokens = jax.random.randint(tkey, (B, S), 0, V, dtype=jnp.int32)
    # key-padding mask: True = padded position (last two tokens of batch item 1)
    mask = jnp.zeros((B, S), dtype=bool).at[1, -2:].set(True)

    out = bert_forward(tokens, mask, params, H)
    out = jax.block_until_ready(out)
    assert out.shape == (B, S, V) and out.dtype == jnp.float32
    assert bool(jnp.all(jnp.isfinite(out)))
    print("KERNEL_OK")
</pallas_src>

<mosaic_0001>
module attributes {stable_mosaic.version = 11 : i64} {
  func.func @encoder_stack_kernel(%arg0: i32, %arg1: i32, %arg2: memref<2x8x32xbf16, #tpu.memory_space<vmem>>, %arg3: memref<2x1x8xf32, #tpu.memory_space<vmem>>, %arg4: memref<1x32x96xbf16, #tpu.memory_space<vmem>>, %arg5: memref<1x32x32xbf16, #tpu.memory_space<vmem>>, %arg6: memref<1x32x128xbf16, #tpu.memory_space<vmem>>, %arg7: memref<1x128x32xbf16, #tpu.memory_space<vmem>>, %arg8: memref<1x9x32xf32, #tpu.memory_space<vmem>>, %arg9: memref<1x1x128xf32, #tpu.memory_space<vmem>>, %arg10: memref<2x8x32xbf16, #tpu.memory_space<vmem>>, %arg11: memref<2x8x32xf32, #tpu.memory_space<vmem>>) attributes {dimension_semantics = [#tpu.dimension_semantics<parallel>, #tpu.dimension_semantics<arbitrary>], iteration_bounds = array<i64: 1, 2>, scalar_prefetch = 0 : i64, scratch_operands = 1 : i64, tpu.core_type = #tpu.core_type<tc>, window_params = [{transform_indices = @transform_0, window_bounds = array<i64: 2, 8, 32>}, {transform_indices = @transform_1, window_bounds = array<i64: 2, 1, 8>}, {transform_indices = @transform_2, window_bounds = array<i64: 1, 32, 96>}, {transform_indices = @transform_3, window_bounds = array<i64: 1, 32, 32>}, {transform_indices = @transform_4, window_bounds = array<i64: 1, 32, 128>}, {transform_indices = @transform_5, window_bounds = array<i64: 1, 128, 32>}, {transform_indices = @transform_6, window_bounds = array<i64: 1, 9, 32>}, {transform_indices = @transform_7, window_bounds = array<i64: 1, 1, 128>}, {transform_indices = @transform_8, window_bounds = array<i64: 2, 8, 32>}]} {
    %c0_i32 = arith.constant 0 : i32
    %0 = arith.cmpi eq, %arg1, %c0_i32 : i32
    %1 = arith.extui %0 : i1 to i32
    %c0_i32_0 = arith.constant 0 : i32
    %2 = arith.cmpi ne, %1, %c0_i32_0 : i32
    scf.if %2 {
      %c0_118 = arith.constant 0 : index
      %c0_119 = arith.constant 0 : index
      %c0_120 = arith.constant 0 : index
      %374 = vector.load %arg2[%c0_118, %c0_119, %c0_120] : memref<2x8x32xbf16, #tpu.memory_space<vmem>>, vector<2x8x32xbf16>
      %375 = arith.extf %374 : vector<2x8x32xbf16> to vector<2x8x32xf32>
      %c0_121 = arith.constant 0 : index
      %c0_122 = arith.constant 0 : index
      %c0_123 = arith.constant 0 : index
      %376 = vector.load %arg11[%c0_121, %c0_122, %c0_123] : memref<2x8x32xf32, #tpu.memory_space<vmem>>, vector<2x8x32xf32>
      tpu.vector_store %arg11[%c0_121, %c0_122, %c0_123], %375 {strides = array<i32>} : memref<2x8x32xf32, #tpu.memory_space<vmem>>, vector<2x8x32xf32>,
    } else {
    }
    %c0 = arith.constant 0 : index
    %c0_1 = arith.constant 0 : index
    %c0_2 = arith.constant 0 : index
    %3 = vector.load %arg8[%c0, %c0_1, %c0_2] : memref<1x9x32xf32, #tpu.memory_space<vmem>>, vector<1x9x32xf32>
    %4 = vector.shape_cast %3 : vector<1x9x32xf32> to vector<9x32xf32>
    %c0_3 = arith.constant 0 : index
    %c0_4 = arith.constant 0 : index
    %c0_5 = arith.constant 0 : index
    %5 = vector.load %arg4[%c0_3, %c0_4, %c0_5] : memref<1x32x96xbf16, #tpu.memory_space<vmem>>, vector<1x32x96xbf16>
    %6 = vector.shape_cast %5 : vector<1x32x96xbf16> to vector<32x96xbf16>
    %c0_6 = arith.constant 0 : index
    %c0_7 = arith.constant 0 : index
    %c0_8 = arith.constant 0 : index
    %7 = vector.load %arg5[%c0_6, %c0_7, %c0_8] : memref<1x32x32xbf16, #tpu.memory_space<vmem>>, vector<1x32x32xbf16>
    %8 = vector.shape_cast %7 : vector<1x32x32xbf16> to vector<32x32xbf16>
    %c0_9 = arith.constant 0 : index
    %c0_10 = arith.constant 0 : index
    %c0_11 = arith.constant 0 : index
    %9 = vector.load %arg11[%c0_9, %c0_10, %c0_11] : memref<2x8x32xf32, #tpu.memory_space<vmem>>, vector<1x8x32xf32>
    %10 = vector.shape_cast %9 : vector<1x8x32xf32> to vector<8x32xf32>
    %c0_12 = arith.constant 0 : index
    %c0_13 = arith.constant 0 : index
    %c0_14 = arith.constant 0 : index
    %11 = vector.load %arg3[%c0_12, %c0_13, %c0_14] : memref<2x1x8xf32, #tpu.memory_space<vmem>>, vector<1x1x8xf32>
    %12 = vector.shape_cast %11 : vector<1x1x8xf32> to vector<1x8xf32>
    %13 = arith.truncf %10 : vector<8x32xf32> to vector<8x32xbf16>
    %cst = arith.constant dense<0.000000e+00> : vector<8x96xf32>
    %14 = tpu.matmul %13, %6, %cst {dimension_numbers = #tpu.dot_dimension_numbers<[1], [0], [0], [1], [0, 0, 1, 1], [], []>} : vector<8x32xbf16>, vector<32x96xbf16>, vector<8x96xf32> -> vector<8x96xf32>
    %15 = vector.extract_strided_slice %14 {offsets = [0, 0], sizes = [8, 32], strides = [1, 1]} : vector<8x96xf32> to vector<8x32xf32>
    %16 = vector.extract_strided_slice %4 {offsets = [0, 0], sizes = [1, 32], strides = [1, 1]} : vector<9x32xf32> to vector<1x32xf32>
    %17 = vector.broadcast %16 : vector<1x32xf32> to vector<8x32xf32>
    %18 = arith.addf %15, %17 : vector<8x32xf32>
    %19 = vector.extract_strided_slice %14 {offsets = [0, 32], sizes = [8, 32], strides = [1, 1]} : vector<8x96xf32> to vector<8x32xf32>
    %20 = vector.extract_strided_slice %4 {offsets = [1, 0], sizes = [1, 32], strides = [1, 1]} : vector<9x32xf32> to vector<1x32xf32>
    %21 = vector.broadcast %20 : vector<1x32xf32> to vector<8x32xf32>
    %22 = arith.addf %19, %21 : vector<8x32xf32>
    %23 = vector.extract_strided_slice %14 {offsets = [0, 64], sizes = [8, 32], strides = [1, 1]} : vector<8x96xf32> to vector<8x32xf32>
    %24 = vector.extract_strided_slice %4 {offsets = [2, 0], sizes = [1, 32], strides = [1, 1]} : vector<9x32xf32> to vector<1x32xf32>
    %25 = vector.broadcast %24 : vector<1x32xf32> to vector<8x32xf32>
    %26 = arith.addf %23, %25 : vector<8x32xf32>
    %27 = vector.extract_strided_slice %18 {offsets = [0, 0], sizes = [8, 8], strides = [1, 1]} : vector<8x32xf32> to vector<8x8xf32>
    %28 = arith.truncf %27 : vector<8x8xf32> to vector<8x8xbf16>
    %29 = vector.extract_strided_slice %22 {offsets = [0, 0], sizes = [8, 8], strides = [1, 1]} : vector<8x32xf32> to vector<8x8xf32>
    %30 = arith.truncf %29 : vector<8x8xf32> to vector<8x8xbf16>
    %31 = vector.extract_strided_slice %26 {offsets = [0, 0], sizes = [8, 8], strides = [1, 1]} : vector<8x32xf32> to vector<8x8xf32>
    %32 = arith.truncf %31 : vector<8x8xf32> to vector<8x8xbf16>
    "tpu.trace_start"() <{level = 10 : i32, message = "qe,ke->qk"}> : () -> ()
    %cst_15 = arith.constant dense<0.000000e+00> : vector<8x8xf32>
    %33 = tpu.matmul %28, %30, %cst_15 {dimension_numbers = #tpu.dot_dimension_numbers<[1], [1], [0], [0], [0, 0, 1, 0], [], []>} : vector<8x8xbf16>, vector<8x8xbf16>, vector<8x8xf32> -> vector<8x8xf32>
    "tpu.trace_stop"() : () -> ()
    %34 = vector.broadcast %12 : vector<1x8xf32> to vector<8x8xf32>
    %35 = arith.addf %33, %34 : vector<8x8xf32>
    %cst_16 = arith.constant dense<0xFF800000> : vector<8xf32>
    %36 = vector.multi_reduction <maximumf>, %35, %cst_16 [1] : vector<8x8xf32> to vector<8xf32>
    %37 = vector.shape_cast %36 : vector<8xf32> to vector<8x1xf32>
    %38 = vector.broadcast %37 : vector<8x1xf32> to vector<8x8xf32>
    %39 = arith.subf %35, %38 : vector<8x8xf32>
    %40 = math.exp %39 : vector<8x8xf32>
    %cst_17 = arith.constant dense<0.000000e+00> : vector<8xf32>
    %41 = vector.multi_reduction <add>, %40, %cst_17 [1] : vector<8x8xf32> to vector<8xf32>
    %42 = vector.shape_cast %41 : vector<8xf32> to vector<8x1xf32>
    %43 = tpu.reciprocal %42 {approx = true} : vector<8x1xf32> -> vector<8x1xf32>
    %44 = vector.broadcast %43 : vector<8x1xf32> to vector<8x8xf32>
    %45 = arith.mulf %40, %44 : vector<8x8xf32>
    %46 = arith.truncf %45 : vector<8x8xf32> to vector<8x8xbf16>
    %cst_18 = arith.constant dense<0.000000e+00> : vector<8x8xf32>
    %47 = tpu.matmul %46, %32, %cst_18 {dimension_numbers = #tpu.dot_dimension_numbers<[1], [0], [0], [1], [0, 0, 1, 1], [], []>} : vector<8x8xbf16>, vector<8x8xbf16>, vector<8x8xf32> -> vector<8x8xf32>
    %48 = vector.extract_strided_slice %18 {offsets = [0, 8], sizes = [8, 8], strides = [1, 1]} : vector<8x32xf32> to vector<8x8xf32>
    %49 = arith.truncf %48 : vector<8x8xf32> to vector<8x8xbf16>
    %50 = vector.extract_strided_slice %22 {offsets = [0, 8], sizes = [8, 8], strides = [1, 1]} : vector<8x32xf32> to vector<8x8xf32>
    %51 = arith.truncf %50 : vector<8x8xf32> to vector<8x8xbf16>
    %52 = vector.extract_strided_slice %26 {offsets = [0, 8], sizes = [8, 8], strides = [1, 1]} : vector<8x32xf32> to vector<8x8xf32>
    %53 = arith.truncf %52 : vector<8x8xf32> to vector<8x8xbf16>
    "tpu.trace_start"() <{level = 10 : i32, message = "qe,ke->qk"}> : () -> ()
    %cst_19 = arith.constant dense<0.000000e+00> : vector<8x8xf32>
    %54 = tpu.matmul %49, %51, %cst_19 {dimension_numbers = #tpu.dot_dimension_numbers<[1], [1], [0], [0], [0, 0, 1, 0], [], []>} : vector<8x8xbf16>, vector<8x8xbf16>, vector<8x8xf32> -> vector<8x8xf32>
    "tpu.trace_stop"() : () -> ()
    %55 = vector.broadcast %12 : vector<1x8xf32> to vector<8x8xf32>
    %56 = arith.addf %54, %55 : vector<8x8xf32>
    %cst_20 = arith.constant dense<0xFF800000> : vector<8xf32>
    %57 = vector.multi_reduction <maximumf>, %56, %cst_20 [1] : vector<8x8xf32> to vector<8xf32>
    %58 = vector.shape_cast %57 : vector<8xf32> to vector<8x1xf32>
    %59 = vector.broadcast %58 : vector<8x1xf32> to vector<8x8xf32>
    %60 = arith.subf %56, %59 : vector<8x8xf32>
    %61 = math.exp %60 : vector<8x8xf32>
    %cst_21 = arith.constant dense<0.000000e+00> : vector<8xf32>
    %62 = vector.multi_reduction <add>, %61, %cst_21 [1] : vector<8x8xf32> to vector<8xf32>
    %63 = vector.shape_cast %62 : vector<8xf32> to vector<8x1xf32>
    %64 = tpu.reciprocal %63 {approx = true} : vector<8x1xf32> -> vector<8x1xf32>
    %65 = vector.broadcast %64 : vector<8x1xf32> to vector<8x8xf32>
    %66 = arith.mulf %61, %65 : vector<8x8xf32>
    %67 = arith.truncf %66 : vector<8x8xf32> to vector<8x8xbf16>
    %cst_22 = arith.constant dense<0.000000e+00> : vector<8x8xf32>
    %68 = tpu.matmul %67, %53, %cst_22 {dimension_numbers = #tpu.dot_dimension_numbers<[1], [0], [0], [1], [0, 0, 1, 1], [], []>} : vector<8x8xbf16>, vector<8x8xbf16>, vector<8x8xf32> -> vector<8x8xf32>
    %69 = vector.extract_strided_slice %18 {offsets = [0, 16], sizes = [8, 8], strides = [1, 1]} : vector<8x32xf32> to vector<8x8xf32>
    %70 = arith.truncf %69 : vector<8x8xf32> to vector<8x8xbf16>
    %71 = vector.extract_strided_slice %22 {offsets = [0, 16], sizes = [8, 8], strides = [1, 1]} : vector<8x32xf32> to vector<8x8xf32>
    %72 = arith.truncf %71 : vector<8x8xf32> to vector<8x8xbf16>
    %73 = vector.extract_strided_slice %26 {offsets = [0, 16], sizes = [8, 8], strides = [1, 1]} : vector<8x32xf32> to vector<8x8xf32>
    %74 = arith.truncf %73 : vector<8x8xf32> to vector<8x8xbf16>
    "tpu.trace_start"() <{level = 10 : i32, message = "qe,ke->qk"}> : () -> ()
    %cst_23 = arith.constant dense<0.000000e+00> : vector<8x8xf32>
    %75 = tpu.matmul %70, %72, %cst_23 {dimension_numbers = #tpu.dot_dimension_numbers<[1], [1], [0], [0], [0, 0, 1, 0], [], []>} : vector<8x8xbf16>, vector<8x8xbf16>, vector<8x8xf32> -> vector<8x8xf32>
    "tpu.trace_stop"() : () -> ()
    %76 = vector.broadcast %12 : vector<1x8xf32> to vector<8x8xf32>
    %77 = arith.addf %75, %76 : vector<8x8xf32>
    %cst_24 = arith.constant dense<0xFF800000> : vector<8xf32>
    %78 = vector.multi_reduction <maximumf>, %77, %cst_24 [1] : vector<8x8xf32> to vector<8xf32>
    %79 = vector.shape_cast %78 : vector<8xf32> to vector<8x1xf32>
    %80 = vector.broadcast %79 : vector<8x1xf32> to vector<8x8xf32>
    %81 = arith.subf %77, %80 : vector<8x8xf32>
    %82 = math.exp %81 : vector<8x8xf32>
    %cst_25 = arith.constant dense<0.000000e+00> : vector<8xf32>
    %83 = vector.multi_reduction <add>, %82, %cst_25 [1] : vector<8x8xf32> to vector<8xf32>
    %84 = vector.shape_cast %83 : vector<8xf32> to vector<8x1xf32>
    %85 = tpu.reciprocal %84 {approx = true} : vector<8x1xf32> -> vector<8x1xf32>
    %86 = vector.broadcast %85 : vector<8x1xf32> to vector<8x8xf32>
    %87 = arith.mulf %82, %86 : vector<8x8xf32>
    %88 = arith.truncf %87 : vector<8x8xf32> to vector<8x8xbf16>
    %cst_26 = arith.constant dense<0.000000e+00> : vector<8x8xf32>
    %89 = tpu.matmul %88, %74, %cst_26 {dimension_numbers = #tpu.dot_dimension_numbers<[1], [0], [0], [1], [0, 0, 1, 1], [], []>} : vector<8x8xbf16>, vector<8x8xbf16>, vector<8x8xf32> -> vector<8x8xf32>
    %90 = vector.extract_strided_slice %18 {offsets = [0, 24], sizes = [8, 8], strides = [1, 1]} : vector<8x32xf32> to vector<8x8xf32>
    %91 = arith.truncf %90 : vector<8x8xf32> to vector<8x8xbf16>
    %92 = vector.extract_strided_slice %22 {offsets = [0, 24], sizes = [8, 8], strides = [1, 1]} : vector<8x32xf32> to vector<8x8xf32>
    %93 = arith.truncf %92 : vector<8x8xf32> to vector<8x8xbf16>
    %94 = vector.extract_strided_slice %26 {offsets = [0, 24], sizes = [8, 8], strides = [1, 1]} : vector<8x32xf32> to vector<8x8xf32>
    %95 = arith.truncf %94 : vector<8x8xf32> to vector<8x8xbf16>
    "tpu.trace_start"() <{level = 10 : i32, message = "qe,ke->qk"}> : () -> ()
    %cst_27 = arith.constant dense<0.000000e+00> : vector<8x8xf32>
    %96 = tpu.matmul %91, %93, %cst_27 {dimension_numbers = #tpu.dot_dimension_numbers<[1], [1], [0], [0], [0, 0, 1, 0], [], []>} : vector<8x8xbf16>, vector<8x8xbf16>, vector<8x8xf32> -> vector<8x8xf32>
    "tpu.trace_stop"() : () -> ()
    %97 = vector.broadcast %12 : vector<1x8xf32> to vector<8x8xf32>
    %98 = arith.addf %96, %97 : vector<8x8xf32>
    %cst_28 = arith.constant dense<0xFF800000> : vector<8xf32>
    %99 = vector.multi_reduction <maximumf>, %98, %cst_28 [1] : vector<8x8xf32> to vector<8xf32>
    %100 = vector.shape_cast %99 : vector<8xf32> to vector<8x1xf32>
    %101 = vector.broadcast %100 : vector<8x1xf32> to vector<8x8xf32>
    %102 = arith.subf %98, %101 : vector<8x8xf32>
    %103 = math.exp %102 : vector<8x8xf32>
    %cst_29 = arith.constant dense<0.000000e+00> : vector<8xf32>
    %104 = vector.multi_reduction <add>, %103, %cst_29 [1] : vector<8x8xf32> to vector<8xf32>
    %105 = vector.shape_cast %104 : vector<8xf32> to vector<8x1xf32>
    %106 = tpu.reciprocal %105 {approx = true} : vector<8x1xf32> -> vector<8x1xf32>
    %107 = vector.broadcast %106 : vector<8x1xf32> to vector<8x8xf32>
    %108 = arith.mulf %103, %107 : vector<8x8xf32>
    %109 = arith.truncf %108 : vector<8x8xf32> to vector<8x8xbf16>
    %cst_30 = arith.constant dense<0.000000e+00> : vector<8x8xf32>
    %110 = tpu.matmul %109, %95, %cst_30 {dimension_numbers = #tpu.dot_dimension_numbers<[1], [0], [0], [1], [0, 0, 1, 1], [], []>} : vector<8x8xbf16>, vector<8x8xbf16>, vector<8x8xf32> -> vector<8x8xf32>
    %111 = tpu.concatenate %47, %68, %89, %110 in 1 : vector<8x8xf32>, vector<8x8xf32>, vector<8x8xf32>, vector<8x8xf32> -> vector<8x32xf32>
    %112 = arith.truncf %111 : vector<8x32xf32> to vector<8x32xbf16>
    %cst_31 = arith.constant dense<0.000000e+00> : vector<8x32xf32>
    %113 = tpu.matmul %112, %8, %cst_31 {dimension_numbers = #tpu.dot_dimension_numbers<[1], [0], [0], [1], [0, 0, 1, 1], [], []>} : vector<8x32xbf16>, vector<32x32xbf16>, vector<8x32xf32> -> vector<8x32xf32>
    %114 = vector.extract_strided_slice %4 {offsets = [3, 0], sizes = [1, 32], strides = [1, 1]} : vector<9x32xf32> to vector<1x32xf32>
    %115 = vector.broadcast %114 : vector<1x32xf32> to vector<8x32xf32>
    %116 = arith.addf %113, %115 : vector<8x32xf32>
    %117 = arith.addf %10, %116 : vector<8x32xf32>
    %118 = vector.extract_strided_slice %4 {offsets = [4, 0], sizes = [1, 32], strides = [1, 1]} : vector<9x32xf32> to vector<1x32xf32>
    %119 = vector.extract_strided_slice %4 {offsets = [5, 0], sizes = [1, 32], strides = [1, 1]} : vector<9x32xf32> to vector<1x32xf32>
    %cst_32 = arith.constant dense<0.000000e+00> : vector<8xf32>
    %120 = vector.multi_reduction <add>, %117, %cst_32 [1] : vector<8x32xf32> to vector<8xf32>
    %121 = vector.shape_cast %120 : vector<8xf32> to vector<8x1xf32>
    %cst_33 = arith.constant 3.200000e+01 : f32
    %122 = vector.broadcast %cst_33 : f32 to vector<8x1xf32>
    %123 = arith.divf %121, %122 : vector<8x1xf32>
    %124 = vector.broadcast %123 : vector<8x1xf32> to vector<8x32xf32>
    %125 = arith.subf %117, %124 : vector<8x32xf32>
    %126 = arith.mulf %125, %125 : vector<8x32xf32>
    %cst_34 = arith.constant dense<0.000000e+00> : vector<8xf32>
    %127 = vector.multi_reduction <add>, %126, %cst_34 [1] : vector<8x32xf32> to vector<8xf32>
    %128 = vector.shape_cast %127 : vector<8xf32> to vector<8x1xf32>
    %cst_35 = arith.constant 3.200000e+01 : f32
    %129 = vector.broadcast %cst_35 : f32 to vector<8x1xf32>
    %130 = arith.divf %128, %129 : vector<8x1xf32>
    %131 = vector.broadcast %123 : vector<8x1xf32> to vector<8x32xf32>
    %132 = arith.subf %117, %131 : vector<8x32xf32>
    %cst_36 = arith.constant 9.99999974E-6 : f32
    %133 = vector.broadcast %cst_36 : f32 to vector<8x1xf32>
    %134 = arith.addf %130, %133 : vector<8x1xf32>
    %135 = math.rsqrt %134 : vector<8x1xf32>
    %136 = vector.broadcast %135 : vector<8x1xf32> to vector<8x32xf32>
    %137 = arith.mulf %132, %136 : vector<8x32xf32>
    %138 = vector.broadcast %118 : vector<1x32xf32> to vector<8x32xf32>
    %139 = arith.mulf %137, %138 : vector<8x32xf32>
    %140 = vector.broadcast %119 : vector<1x32xf32> to vector<8x32xf32>
    %141 = arith.addf %139, %140 : vector<8x32xf32>
    %142 = arith.truncf %141 : vector<8x32xf32> to vector<8x32xbf16>
    %c0_i32_37 = arith.constant 0 : i32
    %c0_i32_38 = arith.constant 0 : i32
    %c0_i32_39 = arith.constant 0 : i32
    %143 = tpu.memref_slice %arg6[%c0_i32_37, %c0_i32_38, %c0_i32_39] : memref<1x32x128xbf16, #tpu.memory_space<vmem>> -> memref<1x32x128xbf16, #tpu.memory_space<vmem>>
    %144 = tpu.memref_squeeze %143 : memref<1x32x128xbf16, #tpu.memory_space<vmem>> -> memref<32x128xbf16, #tpu.memory_space<vmem>>
    %c0_40 = arith.constant 0 : index
    %c0_41 = arith.constant 0 : index
    %145 = vector.load %144[%c0_40, %c0_41] : memref<32x128xbf16, #tpu.memory_space<vmem>>, vector<32x128xbf16>
    %c0_i32_42 = arith.constant 0 : i32
    %c0_i32_43 = arith.constant 0 : i32
    %c0_i32_44 = arith.constant 0 : i32
    %146 = tpu.memref_slice %arg9[%c0_i32_42, %c0_i32_43, %c0_i32_44] : memref<1x1x128xf32, #tpu.memory_space<vmem>> -> memref<1x1x128xf32, #tpu.memory_space<vmem>>
    %147 = tpu.memref_squeeze %146 : memref<1x1x128xf32, #tpu.memory_space<vmem>> -> memref<1x128xf32, #tpu.memory_space<vmem>>
    %c0_45 = arith.constant 0 : index
    %c0_46 = arith.constant 0 : index
    %148 = vector.load %147[%c0_45, %c0_46] : memref<1x128xf32, #tpu.memory_space<vmem>>, vector<1x128xf32>
    %c0_i32_47 = arith.constant 0 : i32
    %c0_i32_48 = arith.constant 0 : i32
    %c0_i32_49 = arith.constant 0 : i32
    %149 = tpu.memref_slice %arg7[%c0_i32_47, %c0_i32_48, %c0_i32_49] : memref<1x128x32xbf16, #tpu.memory_space<vmem>> -> memref<1x128x32xbf16, #tpu.memory_space<vmem>>
    %150 = tpu.memref_squeeze %149 : memref<1x128x32xbf16, #tpu.memory_space<vmem>> -> memref<128x32xbf16, #tpu.memory_space<vmem>>
    %c0_50 = arith.constant 0 : index
    %c0_51 = arith.constant 0 : index
    %151 = vector.load %150[%c0_50, %c0_51] : memref<128x32xbf16, #tpu.memory_space<vmem>>, vector<128x32xbf16>
    %cst_52 = arith.constant dense<0.000000e+00> : vector<8x128xf32>
    %152 = tpu.matmul %142, %145, %cst_52 {dimension_numbers = #tpu.dot_dimension_numbers<[1], [0], [0], [1], [0, 0, 1, 1], [], []>} : vector<8x32xbf16>, vector<32x128xbf16>, vector<8x128xf32> -> vector<8x128xf32>
    %153 = vector.broadcast %148 : vector<1x128xf32> to vector<8x128xf32>
    %154 = arith.addf %152, %153 : vector<8x128xf32>
    %cst_53 = arith.constant 0.000000e+00 : f32
    %155 = vector.broadcast %cst_53 : f32 to vector<8x128xf32>
    %156 = arith.maximumf %154, %155 : vector<8x128xf32>
    %157 = arith.truncf %156 : vector<8x128xf32> to vector<8x128xbf16>
    %cst_54 = arith.constant dense<0.000000e+00> : vector<8x32xf32>
    %158 = tpu.matmul %157, %151, %cst_54 {dimension_numbers = #tpu.dot_dimension_numbers<[1], [0], [0], [1], [0, 0, 1, 1], [], []>} : vector<8x128xbf16>, vector<128x32xbf16>, vector<8x32xf32> -> vector<8x32xf32>
    %159 = vector.extract_strided_slice %4 {offsets = [6, 0], sizes = [1, 32], strides = [1, 1]} : vector<9x32xf32> to vector<1x32xf32>
    %160 = vector.broadcast %159 : vector<1x32xf32> to vector<8x32xf32>
    %161 = arith.addf %158, %160 : vector<8x32xf32>
    %162 = arith.addf %141, %161 : vector<8x32xf32>
    %163 = vector.extract_strided_slice %4 {offsets = [7, 0], sizes = [1, 32], strides = [1, 1]} : vector<9x32xf32> to vector<1x32xf32>
    %164 = vector.extract_strided_slice %4 {offsets = [8, 0], sizes = [1, 32], strides = [1, 1]} : vector<9x32xf32> to vector<1x32xf32>
    %cst_55 = arith.constant dense<0.000000e+00> : vector<8xf32>
    %165 = vector.multi_reduction <add>, %162, %cst_55 [1] : vector<8x32xf32> to vector<8xf32>
    %166 = vector.shape_cast %165 : vector<8xf32> to vector<8x1xf32>
    %cst_56 = arith.constant 3.200000e+01 : f32
    %167 = vector.broadcast %cst_56 : f32 to vector<8x1xf32>
    %168 = arith.divf %166, %167 : vector<8x1xf32>
    %169 = vector.broadcast %168 : vector<8x1xf32> to vector<8x32xf32>
    %170 = arith.subf %162, %169 : vector<8x32xf32>
    %171 = arith.mulf %170, %170 : vector<8x32xf32>
    %cst_57 = arith.constant dense<0.000000e+00> : vector<8xf32>
    %172 = vector.multi_reduction <add>, %171, %cst_57 [1] : vector<8x32xf32> to vector<8xf32>
    %173 = vector.shape_cast %172 : vector<8xf32> to vector<8x1xf32>
    %cst_58 = arith.constant 3.200000e+01 : f32
    %174 = vector.broadcast %cst_58 : f32 to vector<8x1xf32>
    %175 = arith.divf %173, %174 : vector<8x1xf32>
    %176 = vector.broadcast %168 : vector<8x1xf32> to vector<8x32xf32>
    %177 = arith.subf %162, %176 : vector<8x32xf32>
    %cst_59 = arith.constant 9.99999974E-6 : f32
    %178 = vector.broadcast %cst_59 : f32 to vector<8x1xf32>
    %179 = arith.addf %175, %178 : vector<8x1xf32>
    %180 = math.rsqrt %179 : vector<8x1xf32>
    %181 = vector.broadcast %180 : vector<8x1xf32> to vector<8x32xf32>
    %182 = arith.mulf %177, %181 : vector<8x32xf32>
    %183 = vector.broadcast %163 : vector<1x32xf32> to vector<8x32xf32>
    %184 = arith.mulf %182, %183 : vector<8x32xf32>
    %185 = vector.broadcast %164 : vector<1x32xf32> to vector<8x32xf32>
    %186 = arith.addf %184, %185 : vector<8x32xf32>
    %c0_60 = arith.constant 0 : index
    %c0_61 = arith.constant 0 : index
    %c0_62 = arith.constant 0 : index
    %187 = vector.load %arg11[%c0_60, %c0_61, %c0_62] : memref<2x8x32xf32, #tpu.memory_space<vmem>>, vector<1x8x32xf32>
    %188 = vector.shape_cast %187 : vector<1x8x32xf32> to vector<8x32xf32>
    %189 = vector.shape_cast %186 : vector<8x32xf32> to vector<1x8x32xf32>
    tpu.vector_store %arg11[%c0_60, %c0_61, %c0_62], %189 {strides = array<i32>} : memref<2x8x32xf32, #tpu.memory_space<vmem>>, vector<1x8x32xf32>,
    %c1 = arith.constant 1 : index
    %c0_63 = arith.constant 0 : index
    %c0_64 = arith.constant 0 : index
    %190 = vector.load %arg11[%c1, %c0_63, %c0_64] : memref<2x8x32xf32, #tpu.memory_space<vmem>>, vector<1x8x32xf32>
    %191 = vector.shape_cast %190 : vector<1x8x32xf32> to vector<8x32xf32>
    %c1_65 = arith.constant 1 : index
    %c0_66 = arith.constant 0 : index
    %c0_67 = arith.constant 0 : index
    %192 = vector.load %arg3[%c1_65, %c0_66, %c0_67] : memref<2x1x8xf32, #tpu.memory_space<vmem>>, vector<1x1x8xf32>
    %193 = vector.shape_cast %192 : vector<1x1x8xf32> to vector<1x8xf32>
    %194 = arith.truncf %191 : vector<8x32xf32> to vector<8x32xbf16>
    %cst_68 = arith.constant dense<0.000000e+00> : vector<8x96xf32>
    %195 = tpu.matmul %194, %6, %cst_68 {dimension_numbers = #tpu.dot_dimension_numbers<[1], [0], [0], [1], [0, 0, 1, 1], [], []>} : vector<8x32xbf16>, vector<32x96xbf16>, vector<8x96xf32> -> vector<8x96xf32>
    %196 = vector.extract_strided_slice %195 {offsets = [0, 0], sizes = [8, 32], strides = [1, 1]} : vector<8x96xf32> to vector<8x32xf32>
    %197 = vector.extract_strided_slice %4 {offsets = [0, 0], sizes = [1, 32], strides = [1, 1]} : vector<9x32xf32> to vector<1x32xf32>
    %198 = vector.broadcast %197 : vector<1x32xf32> to vector<8x32xf32>
    %199 = arith.addf %196, %198 : vector<8x32xf32>
    %200 = vector.extract_strided_slice %195 {offsets = [0, 32], sizes = [8, 32], strides = [1, 1]} : vector<8x96xf32> to vector<8x32xf32>
    %201 = vector.extract_strided_slice %4 {offsets = [1, 0], sizes = [1, 32], strides = [1, 1]} : vector<9x32xf32> to vector<1x32xf32>
    %202 = vector.broadcast %201 : vector<1x32xf32> to vector<8x32xf32>
    %203 = arith.addf %200, %202 : vector<8x32xf32>
    %204 = vector.extract_strided_slice %195 {offsets = [0, 64], sizes = [8, 32], strides = [1, 1]} : vector<8x96xf32> to vector<8x32xf32>
    %205 = vector.extract_strided_slice %4 {offsets = [2, 0], sizes = [1, 32], strides = [1, 1]} : vector<9x32xf32> to vector<1x32xf32>
    %206 = vector.broadcast %205 : vector<1x32xf32> to vector<8x32xf32>
    %207 = arith.addf %204, %206 : vector<8x32xf32>
    %208 = vector.extract_strided_slice %199 {offsets = [0, 0], sizes = [8, 8], strides = [1, 1]} : vector<8x32xf32> to vector<8x8xf32>
    %209 = arith.truncf %208 : vector<8x8xf32> to vector<8x8xbf16>
    %210 = vector.extract_strided_slice %203 {offsets = [0, 0], sizes = [8, 8], strides = [1, 1]} : vector<8x32xf32> to vector<8x8xf32>
    %211 = arith.truncf %210 : vector<8x8xf32> to vector<8x8xbf16>
    %212 = vector.extract_strided_slice %207 {offsets = [0, 0], sizes = [8, 8], strides = [1, 1]} : vector<8x32xf32> to vector<8x8xf32>
    %213 = arith.truncf %212 : vector<8x8xf32> to vector<8x8xbf16>
    "tpu.trace_start"() <{level = 10 : i32, message = "qe,ke->qk"}> : () -> ()
    %cst_69 = arith.constant dense<0.000000e+00> : vector<8x8xf32>
    %214 = tpu.matmul %209, %211, %cst_69 {dimension_numbers = #tpu.dot_dimension_numbers<[1], [1], [0], [0], [0, 0, 1, 0], [], []>} : vector<8x8xbf16>, vector<8x8xbf16>, vector<8x8xf32> -> vector<8x8xf32>
    "tpu.trace_stop"() : () -> ()
    %215 = vector.broadcast %193 : vector<1x8xf32> to vector<8x8xf32>
    %216 = arith.addf %214, %215 : vector<8x8xf32>
    %cst_70 = arith.constant dense<0xFF800000> : vector<8xf32>
    %217 = vector.multi_reduction <maximumf>, %216, %cst_70 [1] : vector<8x8xf32> to vector<8xf32>
    %218 = vector.shape_cast %217 : vector<8xf32> to vector<8x1xf32>
    %219 = vector.broadcast %218 : vector<8x1xf32> to vector<8x8xf32>
    %220 = arith.subf %216, %219 : vector<8x8xf32>
    %221 = math.exp %220 : vector<8x8xf32>
    %cst_71 = arith.constant dense<0.000000e+00> : vector<8xf32>
    %222 = vector.multi_reduction <add>, %221, %cst_71 [1] : vector<8x8xf32> to vector<8xf32>
    %223 = vector.shape_cast %222 : vector<8xf32> to vector<8x1xf32>
    %224 = tpu.reciprocal %223 {approx = true} : vector<8x1xf32> -> vector<8x1xf32>
    %225 = vector.broadcast %224 : vector<8x1xf32> to vector<8x8xf32>
    %226 = arith.mulf %221, %225 : vector<8x8xf32>
    %227 = arith.truncf %226 : vector<8x8xf32> to vector<8x8xbf16>
    %cst_72 = arith.constant dense<0.000000e+00> : vector<8x8xf32>
    %228 = tpu.matmul %227, %213, %cst_72 {dimension_numbers = #tpu.dot_dimension_numbers<[1], [0], [0], [1], [0, 0, 1, 1], [], []>} : vector<8x8xbf16>, vector<8x8xbf16>, vector<8x8xf32> -> vector<8x8xf32>
    %229 = vector.extract_strided_slice %199 {offsets = [0, 8], sizes = [8, 8], strides = [1, 1]} : vector<8x32xf32> to vector<8x8xf32>
    %230 = arith.truncf %229 : vector<8x8xf32> to vector<8x8xbf16>
    %231 = vector.extract_strided_slice %203 {offsets = [0, 8], sizes = [8, 8], strides = [1, 1]} : vector<8x32xf32> to vector<8x8xf32>
    %232 = arith.truncf %231 : vector<8x8xf32> to vector<8x8xbf16>
    %233 = vector.extract_strided_slice %207 {offsets = [0, 8], sizes = [8, 8], strides = [1, 1]} : vector<8x32xf32> to vector<8x8xf32>
    %234 = arith.truncf %233 : vector<8x8xf32> to vector<8x8xbf16>
    "tpu.trace_start"() <{level = 10 : i32, message = "qe,ke->qk"}> : () -> ()
    %cst_73 = arith.constant dense<0.000000e+00> : vector<8x8xf32>
    %235 = tpu.matmul %230, %232, %cst_73 {dimension_numbers = #tpu.dot_dimension_numbers<[1], [1], [0], [0], [0, 0, 1, 0], [], []>} : vector<8x8xbf16>, vector<8x8xbf16>, vector<8x8xf32> -> vector<8x8xf32>
    "tpu.trace_stop"() : () -> ()
    %236 = vector.broadcast %193 : vector<1x8xf32> to vector<8x8xf32>
    %237 = arith.addf %235, %236 : vector<8x8xf32>
    %cst_74 = arith.constant dense<0xFF800000> : vector<8xf32>
    %238 = vector.multi_reduction <maximumf>, %237, %cst_74 [1] : vector<8x8xf32> to vector<8xf32>
    %239 = vector.shape_cast %238 : vector<8xf32> to vector<8x1xf32>
    %240 = vector.broadcast %239 : vector<8x1xf32> to vector<8x8xf32>
    %241 = arith.subf %237, %240 : vector<8x8xf32>
    %242 = math.exp %241 : vector<8x8xf32>
    %cst_75 = arith.constant dense<0.000000e+00> : vector<8xf32>
    %243 = vector.multi_reduction <add>, %242, %cst_75 [1] : vector<8x8xf32> to vector<8xf32>
    %244 = vector.shape_cast %243 : vector<8xf32> to vector<8x1xf32>
    %245 = tpu.reciprocal %244 {approx = true} : vector<8x1xf32> -> vector<8x1xf32>
    %246 = vector.broadcast %245 : vector<8x1xf32> to vector<8x8xf32>
    %247 = arith.mulf %242, %246 : vector<8x8xf32>
    %248 = arith.truncf %247 : vector<8x8xf32> to vector<8x8xbf16>
    %cst_76 = arith.constant dense<0.000000e+00> : vector<8x8xf32>
    %249 = tpu.matmul %248, %234, %cst_76 {dimension_numbers = #tpu.dot_dimension_numbers<[1], [0], [0], [1], [0, 0, 1, 1], [], []>} : vector<8x8xbf16>, vector<8x8xbf16>, vector<8x8xf32> -> vector<8x8xf32>
    %250 = vector.extract_strided_slice %199 {offsets = [0, 16], sizes = [8, 8], strides = [1, 1]} : vector<8x32xf32> to vector<8x8xf32>
    %251 = arith.truncf %250 : vector<8x8xf32> to vector<8x8xbf16>
    %252 = vector.extract_strided_slice %203 {offsets = [0, 16], sizes = [8, 8], strides = [1, 1]} : vector<8x32xf32> to vector<8x8xf32>
    %253 = arith.truncf %252 : vector<8x8xf32> to vector<8x8xbf16>
    %254 = vector.extract_strided_slice %207 {offsets = [0, 16], sizes = [8, 8], strides = [1, 1]} : vector<8x32xf32> to vector<8x8xf32>
    %255 = arith.truncf %254 : vector<8x8xf32> to vector<8x8xbf16>
    "tpu.trace_start"() <{level = 10 : i32, message = "qe,ke->qk"}> : () -> ()
    %cst_77 = arith.constant dense<0.000000e+00> : vector<8x8xf32>
    %256 = tpu.matmul %251, %253, %cst_77 {dimension_numbers = #tpu.dot_dimension_numbers<[1], [1], [0], [0], [0, 0, 1, 0], [], []>} : vector<8x8xbf16>, vector<8x8xbf16>, vector<8x8xf32> -> vector<8x8xf32>
    "tpu.trace_stop"() : () -> ()
    %257 = vector.broadcast %193 : vector<1x8xf32> to vector<8x8xf32>
    %258 = arith.addf %256, %257 : vector<8x8xf32>
    %cst_78 = arith.constant dense<0xFF800000> : vector<8xf32>
    %259 = vector.multi_reduction <maximumf>, %258, %cst_78 [1] : vector<8x8xf32> to vector<8xf32>
    %260 = vector.shape_cast %259 : vector<8xf32> to vector<8x1xf32>
    %261 = vector.broadcast %260 : vector<8x1xf32> to vector<8x8xf32>
    %262 = arith.subf %258, %261 : vector<8x8xf32>
    %263 = math.exp %262 : vector<8x8xf32>
    %cst_79 = arith.constant dense<0.000000e+00> : vector<8xf32>
    %264 = vector.multi_reduction <add>, %263, %cst_79 [1] : vector<8x8xf32> to vector<8xf32>
    %265 = vector.shape_cast %264 : vector<8xf32> to vector<8x1xf32>
    %266 = tpu.reciprocal %265 {approx = true} : vector<8x1xf32> -> vector<8x1xf32>
    %267 = vector.broadcast %266 : vector<8x1xf32> to vector<8x8xf32>
    %268 = arith.mulf %263, %267 : vector<8x8xf32>
    %269 = arith.truncf %268 : vector<8x8xf32> to vector<8x8xbf16>
    %cst_80 = arith.constant dense<0.000000e+00> : vector<8x8xf32>
    %270 = tpu.matmul %269, %255, %cst_80 {dimension_numbers = #tpu.dot_dimension_numbers<[1], [0], [0], [1], [0, 0, 1, 1], [], []>} : vector<8x8xbf16>, vector<8x8xbf16>, vector<8x8xf32> -> vector<8x8xf32>
    %271 = vector.extract_strided_slice %199 {offsets = [0, 24], sizes = [8, 8], strides = [1, 1]} : vector<8x32xf32> to vector<8x8xf32>
    %272 = arith.truncf %271 : vector<8x8xf32> to vector<8x8xbf16>
    %273 = vector.extract_strided_slice %203 {offsets = [0, 24], sizes = [8, 8], strides = [1, 1]} : vector<8x32xf32> to vector<8x8xf32>
    %274 = arith.truncf %273 : vector<8x8xf32> to vector<8x8xbf16>
    %275 = vector.extract_strided_slice %207 {offsets = [0, 24], sizes = [8, 8], strides = [1, 1]} : vector<8x32xf32> to vector<8x8xf32>
    %276 = arith.truncf %275 : vector<8x8xf32> to vector<8x8xbf16>
    "tpu.trace_start"() <{level = 10 : i32, message = "qe,ke->qk"}> : () -> ()
    %cst_81 = arith.constant dense<0.000000e+00> : vector<8x8xf32>
    %277 = tpu.matmul %272, %274, %cst_81 {dimension_numbers = #tpu.dot_dimension_numbers<[1], [1], [0], [0], [0, 0, 1, 0], [], []>} : vector<8x8xbf16>, vector<8x8xbf16>, vector<8x8xf32> -> vector<8x8xf32>
    "tpu.trace_stop"() : () -> ()
    %278 = vector.broadcast %193 : vector<1x8xf32> to vector<8x8xf32>
    %279 = arith.addf %277, %278 : vector<8x8xf32>
    %cst_82 = arith.constant dense<0xFF800000> : vector<8xf32>
    %280 = vector.multi_reduction <maximumf>, %279, %cst_82 [1] : vector<8x8xf32> to vector<8xf32>
    %281 = vector.shape_cast %280 : vector<8xf32> to vector<8x1xf32>
    %282 = vector.broadcast %281 : vector<8x1xf32> to vector<8x8xf32>
    %283 = arith.subf %279, %282 : vector<8x8xf32>
    %284 = math.exp %283 : vector<8x8xf32>
    %cst_83 = arith.constant dense<0.000000e+00> : vector<8xf32>
    %285 = vector.multi_reduction <add>, %284, %cst_83 [1] : vector<8x8xf32> to vector<8xf32>
    %286 = vector.shape_cast %285 : vector<8xf32> to vector<8x1xf32>
    %287 = tpu.reciprocal %286 {approx = true} : vector<8x1xf32> -> vector<8x1xf32>
    %288 = vector.broadcast %287 : vector<8x1xf32> to vector<8x8xf32>
    %289 = arith.mulf %284, %288 : vector<8x8xf32>
    %290 = arith.truncf %289 : vector<8x8xf32> to vector<8x8xbf16>
    %cst_84 = arith.constant dense<0.000000e+00> : vector<8x8xf32>
    %291 = tpu.matmul %290, %276, %cst_84 {dimension_numbers = #tpu.dot_dimension_numbers<[1], [0], [0], [1], [0, 0, 1, 1], [], []>} : vector<8x8xbf16>, vector<8x8xbf16>, vector<8x8xf32> -> vector<8x8xf32>
    %292 = tpu.concatenate %228, %249, %270, %291 in 1 : vector<8x8xf32>, vector<8x8xf32>, vector<8x8xf32>, vector<8x8xf32> -> vector<8x32xf32>
    %293 = arith.truncf %292 : vector<8x32xf32> to vector<8x32xbf16>
    %cst_85 = arith.constant dense<0.000000e+00> : vector<8x32xf32>
    %294 = tpu.matmul %293, %8, %cst_85 {dimension_numbers = #tpu.dot_dimension_numbers<[1], [0], [0], [1], [0, 0, 1, 1], [], []>} : vector<8x32xbf16>, vector<32x32xbf16>, vector<8x32xf32> -> vector<8x32xf32>
    %295 = vector.extract_strided_slice %4 {offsets = [3, 0], sizes = [1, 32], strides = [1, 1]} : vector<9x32xf32> to vector<1x32xf32>
    %296 = vector.broadcast %295 : vector<1x32xf32> to vector<8x32xf32>
    %297 = arith.addf %294, %296 : vector<8x32xf32>
    %298 = arith.addf %191, %297 : vector<8x32xf32>
    %299 = vector.extract_strided_slice %4 {offsets = [4, 0], sizes = [1, 32], strides = [1, 1]} : vector<9x32xf32> to vector<1x32xf32>
    %300 = vector.extract_strided_slice %4 {offsets = [5, 0], sizes = [1, 32], strides = [1, 1]} : vector<9x32xf32> to vector<1x32xf32>
    %cst_86 = arith.constant dense<0.000000e+00> : vector<8xf32>
    %301 = vector.multi_reduction <add>, %298, %cst_86 [1] : vector<8x32xf32> to vector<8xf32>
    %302 = vector.shape_cast %301 : vector<8xf32> to vector<8x1xf32>
    %cst_87 = arith.constant 3.200000e+01 : f32
    %303 = vector.broadcast %cst_87 : f32 to vector<8x1xf32>
    %304 = arith.divf %302, %303 : vector<8x1xf32>
    %305 = vector.broadcast %304 : vector<8x1xf32> to vector<8x32xf32>
    %306 = arith.subf %298, %305 : vector<8x32xf32>
    %307 = arith.mulf %306, %306 : vector<8x32xf32>
    %cst_88 = arith.constant dense<0.000000e+00> : vector<8xf32>
    %308 = vector.multi_reduction <add>, %307, %cst_88 [1] : vector<8x32xf32> to vector<8xf32>
    %309 = vector.shape_cast %308 : vector<8xf32> to vector<8x1xf32>
    %cst_89 = arith.constant 3.200000e+01 : f32
    %310 = vector.broadcast %cst_89 : f32 to vector<8x1xf32>
    %311 = arith.divf %309, %310 : vector<8x1xf32>
    %312 = vector.broadcast %304 : vector<8x1xf32> to vector<8x32xf32>
    %313 = arith.subf %298, %312 : vector<8x32xf32>
    %cst_90 = arith.constant 9.99999974E-6 : f32
    %314 = vector.broadcast %cst_90 : f32 to vector<8x1xf32>
    %315 = arith.addf %311, %314 : vector<8x1xf32>
    %316 = math.rsqrt %315 : vector<8x1xf32>
    %317 = vector.broadcast %316 : vector<8x1xf32> to vector<8x32xf32>
    %318 = arith.mulf %313, %317 : vector<8x32xf32>
    %319 = vector.broadcast %299 : vector<1x32xf32> to vector<8x32xf32>
    %320 = arith.mulf %318, %319 : vector<8x32xf32>
    %321 = vector.broadcast %300 : vector<1x32xf32> to vector<8x32xf32>
    %322 = arith.addf %320, %321 : vector<8x32xf32>
    %323 = arith.truncf %322 : vector<8x32xf32> to vector<8x32xbf16>
    %c0_i32_91 = arith.constant 0 : i32
    %c0_i32_92 = arith.constant 0 : i32
    %c0_i32_93 = arith.constant 0 : i32
    %324 = tpu.memref_slice %arg6[%c0_i32_91, %c0_i32_92, %c0_i32_93] : memref<1x32x128xbf16, #tpu.memory_space<vmem>> -> memref<1x32x128xbf16, #tpu.memory_space<vmem>>
    %325 = tpu.memref_squeeze %324 : memref<1x32x128xbf16, #tpu.memory_space<vmem>> -> memref<32x128xbf16, #tpu.memory_space<vmem>>
    %c0_94 = arith.constant 0 : index
    %c0_95 = arith.constant 0 : index
    %326 = vector.load %325[%c0_94, %c0_95] : memref<32x128xbf16, #tpu.memory_space<vmem>>, vector<32x128xbf16>
    %c0_i32_96 = arith.constant 0 : i32
    %c0_i32_97 = arith.constant 0 : i32
    %c0_i32_98 = arith.constant 0 : i32
    %327 = tpu.memref_slice %arg9[%c0_i32_96, %c0_i32_97, %c0_i32_98] : memref<1x1x128xf32, #tpu.memory_space<vmem>> -> memref<1x1x128xf32, #tpu.memory_space<vmem>>
    %328 = tpu.memref_squeeze %327 : memref<1x1x128xf32, #tpu.memory_space<vmem>> -> memref<1x128xf32, #tpu.memory_space<vmem>>
    %c0_99 = arith.constant 0 : index
    %c0_100 = arith.constant 0 : index
    %329 = vector.load %328[%c0_99, %c0_100] : memref<1x128xf32, #tpu.memory_space<vmem>>, vector<1x128xf32>
    %c0_i32_101 = arith.constant 0 : i32
    %c0_i32_102 = arith.constant 0 : i32
    %c0_i32_103 = arith.constant 0 : i32
    %330 = tpu.memref_slice %arg7[%c0_i32_101, %c0_i32_102, %c0_i32_103] : memref<1x128x32xbf16, #tpu.memory_space<vmem>> -> memref<1x128x32xbf16, #tpu.memory_space<vmem>>
    %331 = tpu.memref_squeeze %330 : memref<1x128x32xbf16, #tpu.memory_space<vmem>> -> memref<128x32xbf16, #tpu.memory_space<vmem>>
    %c0_104 = arith.constant 0 : index
    %c0_105 = arith.constant 0 : index
    %332 = vector.load %331[%c0_104, %c0_105] : memref<128x32xbf16, #tpu.memory_space<vmem>>, vector<128x32xbf16>
    %cst_106 = arith.constant dense<0.000000e+00> : vector<8x128xf32>
    %333 = tpu.matmul %323, %326, %cst_106 {dimension_numbers = #tpu.dot_dimension_numbers<[1], [0], [0], [1], [0, 0, 1, 1], [], []>} : vector<8x32xbf16>, vector<32x128xbf16>, vector<8x128xf32> -> vector<8x128xf32>
    %334 = vector.broadcast %329 : vector<1x128xf32> to vector<8x128xf32>
    %335 = arith.addf %333, %334 : vector<8x128xf32>
    %cst_107 = arith.constant 0.000000e+00 : f32
    %336 = vector.broadcast %cst_107 : f32 to vector<8x128xf32>
    %337 = arith.maximumf %335, %336 : vector<8x128xf32>
    %338 = arith.truncf %337 : vector<8x128xf32> to vector<8x128xbf16>
    %cst_108 = arith.constant dense<0.000000e+00> : vector<8x32xf32>
    %339 = tpu.matmul %338, %332, %cst_108 {dimension_numbers = #tpu.dot_dimension_numbers<[1], [0], [0], [1], [0, 0, 1, 1], [], []>} : vector<8x128xbf16>, vector<128x32xbf16>, vector<8x32xf32> -> vector<8x32xf32>
    %340 = vector.extract_strided_slice %4 {offsets = [6, 0], sizes = [1, 32], strides = [1, 1]} : vector<9x32xf32> to vector<1x32xf32>
    %341 = vector.broadcast %340 : vector<1x32xf32> to vector<8x32xf32>
    %342 = arith.addf %339, %341 : vector<8x32xf32>
    %343 = arith.addf %322, %342 : vector<8x32xf32>
    %344 = vector.extract_strided_slice %4 {offsets = [7, 0], sizes = [1, 32], strides = [1, 1]} : vector<9x32xf32> to vector<1x32xf32>
    %345 = vector.extract_strided_slice %4 {offsets = [8, 0], sizes = [1, 32], strides = [1, 1]} : vector<9x32xf32> to vector<1x32xf32>
    %cst_109 = arith.constant dense<0.000000e+00> : vector<8xf32>
    %346 = vector.multi_reduction <add>, %343, %cst_109 [1] : vector<8x32xf32> to vector<8xf32>
    %347 = vector.shape_cast %346 : vector<8xf32> to vector<8x1xf32>
    %cst_110 = arith.constant 3.200000e+01 : f32
    %348 = vector.broadcast %cst_110 : f32 to vector<8x1xf32>
    %349 = arith.divf %347, %348 : vector<8x1xf32>
    %350 = vector.broadcast %349 : vector<8x1xf32> to vector<8x32xf32>
    %351 = arith.subf %343, %350 : vector<8x32xf32>
    %352 = arith.mulf %351, %351 : vector<8x32xf32>
    %cst_111 = arith.constant dense<0.000000e+00> : vector<8xf32>
    %353 = vector.multi_reduction <add>, %352, %cst_111 [1] : vector<8x32xf32> to vector<8xf32>
    %354 = vector.shape_cast %353 : vector<8xf32> to vector<8x1xf32>
    %cst_112 = arith.constant 3.200000e+01 : f32
    %355 = vector.broadcast %cst_112 : f32 to vector<8x1xf32>
    %356 = arith.divf %354, %355 : vector<8x1xf32>
    %357 = vector.broadcast %349 : vector<8x1xf32> to vector<8x32xf32>
    %358 = arith.subf %343, %357 : vector<8x32xf32>
    %cst_113 = arith.constant 9.99999974E-6 : f32
    %359 = vector.broadcast %cst_113 : f32 to vector<8x1xf32>
    %360 = arith.addf %356, %359 : vector<8x1xf32>
    %361 = math.rsqrt %360 : vector<8x1xf32>
    %362 = vector.broadcast %361 : vector<8x1xf32> to vector<8x32xf32>
    %363 = arith.mulf %358, %362 : vector<8x32xf32>
    %364 = vector.broadcast %344 : vector<1x32xf32> to vector<8x32xf32>
    %365 = arith.mulf %363, %364 : vector<8x32xf32>
    %366 = vector.broadcast %345 : vector<1x32xf32> to vector<8x32xf32>
    %367 = arith.addf %365, %366 : vector<8x32xf32>
    %c1_114 = arith.constant 1 : index
    %c0_115 = arith.constant 0 : index
    %c0_116 = arith.constant 0 : index
    %368 = vector.load %arg11[%c1_114, %c0_115, %c0_116] : memref<2x8x32xf32, #tpu.memory_space<vmem>>, vector<1x8x32xf32>
    %369 = vector.shape_cast %368 : vector<1x8x32xf32> to vector<8x32xf32>
    %370 = vector.shape_cast %367 : vector<8x32xf32> to vector<1x8x32xf32>
    tpu.vector_store %arg11[%c1_114, %c0_115, %c0_116], %370 {strides = array<i32>} : memref<2x8x32xf32, #tpu.memory_space<vmem>>, vector<1x8x32xf32>,
    %c1_i32 = arith.constant 1 : i32
    %371 = arith.cmpi eq, %arg1, %c1_i32 : i32
    %372 = arith.extui %371 : i1 to i32
    %c0_i32_117 = arith.constant 0 : i32
    %373 = arith.cmpi ne, %372, %c0_i32_117 : i32
    scf.if %373 {
      %c0_118 = arith.constant 0 : index
      %c0_119 = arith.constant 0 : index
      %c0_120 = arith.constant 0 : index
      %374 = vector.load %arg11[%c0_118, %c0_119, %c0_120] : memref<2x8x32xf32, #tpu.memory_space<vmem>>, vector<2x8x32xf32>
      %375 = arith.truncf %374 : vector<2x8x32xf32> to vector<2x8x32xbf16>
      %c0_121 = arith.constant 0 : index
      %c0_122 = arith.constant 0 : index
      %c0_123 = arith.constant 0 : index
      %376 = vector.load %arg10[%c0_121, %c0_122, %c0_123] : memref<2x8x32xbf16, #tpu.memory_space<vmem>>, vector<2x8x32xbf16>
      tpu.vector_store %arg10[%c0_121, %c0_122, %c0_123], %375 {strides = array<i32>} : memref<2x8x32xbf16, #tpu.memory_space<vmem>>, vector<2x8x32xbf16>,
    } else {
    }
    return
  }
  func.func @transform_0(%arg0: i32, %arg1: i32) -> (i32, i32, i32) {
    %c0_i32 = arith.constant 0 : i32
    %c0_i32_0 = arith.constant 0 : i32
    %c0_i32_1 = arith.constant 0 : i32
    return %arg0, %c0_i32, %c0_i32_0 : i32, i32, i32
  }
  func.func @transform_1(%arg0: i32, %arg1: i32) -> (i32, i32, i32) {
    %c0_i32 = arith.constant 0 : i32
    %c0_i32_0 = arith.constant 0 : i32
    %c0_i32_1 = arith.constant 0 : i32
    return %arg0, %c0_i32, %c0_i32_0 : i32, i32, i32
  }
  func.func @transform_2(%arg0: i32, %arg1: i32) -> (i32, i32, i32) {
    %c0_i32 = arith.constant 0 : i32
    %c0_i32_0 = arith.constant 0 : i32
    %c0_i32_1 = arith.constant 0 : i32
    return %arg1, %c0_i32, %c0_i32_0 : i32, i32, i32
  }
  func.func @transform_3(%arg0: i32, %arg1: i32) -> (i32, i32, i32) {
    %c0_i32 = arith.constant 0 : i32
    %c0_i32_0 = arith.constant 0 : i32
    %c0_i32_1 = arith.constant 0 : i32
    return %arg1, %c0_i32, %c0_i32_0 : i32, i32, i32
  }
  func.func @transform_4(%arg0: i32, %arg1: i32) -> (i32, i32, i32) {
    %c0_i32 = arith.constant 0 : i32
    %c0_i32_0 = arith.constant 0 : i32
    %c0_i32_1 = arith.constant 0 : i32
    return %arg1, %c0_i32, %c0_i32_0 : i32, i32, i32
  }
  func.func @transform_5(%arg0: i32, %arg1: i32) -> (i32, i32, i32) {
    %c0_i32 = arith.constant 0 : i32
    %c0_i32_0 = arith.constant 0 : i32
    %c0_i32_1 = arith.constant 0 : i32
    return %arg1, %c0_i32, %c0_i32_0 : i32, i32, i32
  }
  func.func @transform_6(%arg0: i32, %arg1: i32) -> (i32, i32, i32) {
    %c0_i32 = arith.constant 0 : i32
    %c0_i32_0 = arith.constant 0 : i32
    %c0_i32_1 = arith.constant 0 : i32
    return %arg1, %c0_i32, %c0_i32_0 : i32, i32, i32
  }
  func.func @transform_7(%arg0: i32, %arg1: i32) -> (i32, i32, i32) {
    %c0_i32 = arith.constant 0 : i32
    %c0_i32_0 = arith.constant 0 : i32
    %c0_i32_1 = arith.constant 0 : i32
    return %arg1, %c0_i32, %c0_i32_0 : i32, i32, i32
  }
  func.func @transform_8(%arg0: i32, %arg1: i32) -> (i32, i32, i32) {
    %c0_i32 = arith.constant 0 : i32
    %c0_i32_0 = arith.constant 0 : i32
    %c0_i32_1 = arith.constant 0 : i32
    return %arg0, %c0_i32, %c0_i32_0 : i32, i32, i32
  }
}

</mosaic_0001>

<bundles_post_ra>
// kernel: tpu_custom_call.1
= control target key start
LH: loop header
LB: loop body
LE: loop exit
PB: predicated region body
PF: predicated region fallthrough
CT: control target
= control target key end

     0   :  { %s4073_s0 = inlined_call_operand.hbm [shape: bf16[2,8,32], index: 0, kind: input, shape index: {}]   ;;  %s4074_s1 = inlined_call_operand.hbm [shape: f32[2,1,8], index: 1, kind: input, shape index: {}]   ;;  %s4075_s2 = inlined_call_operand.hbm [shape: bf16[2,32,96], index: 2, kind: input, shape index: {}]   ;;  %s4076_s3 = inlined_call_operand.hbm [shape: bf16[2,32,32], index: 3, kind: input, shape index: {}]   ;;  %s4077_s4 = inlined_call_operand.hbm [shape: bf16[2,32,128], index: 4, kind: input, shape index: {}]   ;;  %s4078_s5 = inlined_call_operand.hbm [shape: bf16[2,128,32], index: 5, kind: input, shape index: {}]   ;;  %s4079_s6 = inlined_call_operand.hbm [shape: f32[2,9,32], index: 6, kind: input, shape index: {}]   ;;  %s4080_s7 = inlined_call_operand.hbm [shape: f32[2,1,128], index: 7, kind: input, shape index: {}]   ;;  %s4081_s8 = inlined_call_operand.hbm [shape: bf16[2,8,32], index: 8, kind: output, shape index: {}]  }
   0x1   :  { %4099 = sst [smem:[#allocation23_spill]] %s4073_s0 }
   0x2   :  { %4100 = sst [smem:[#allocation24_spill]] %s4075_s2 }
   0x3   :  { %4101 = sst [smem:[#allocation25_spill]] %s4076_s3 }
   0x4   :  { %13 = vsyncpa [#allocation4], 0 }
   0x5   :  { %14 = vsyncpa [#allocation7], 0 }
   0x6   :  { %15 = vsyncpa [#allocation5], 0  ;;  %s3332_s27 = smov 0   ;;  %s3334_s28 = smov 0  }
   0x7   :  { %s3336_s29 = smov 0   ;;  %s3338_s30 = smov 0  }
   0x8   :  { %s3340_s9 = smov 0   ;;  %s3342_s10 = smov 0  }
   0x9 LB: > { %4102 = sst [smem:[#allocation19_spill]] %s3240_s29  ;;  %s3361_s11 = sadd.s32 4294967295, %s3252_s10   ;;  %s3252_s10 = sphi %s3342_s10, %s21_s10   ;;  %s3248_s9 = sphi %s3340_s9, %s4136_s9   ;;  %s3244_s30 = sphi %s3338_s30, %s4135_s30   ;;  %s3240_s29 = sphi %s3336_s29, %s4131_s29   ;;  %s3236_s28 = sphi %s3334_s28, %s4134_s28   ;;  %s3232_s27 = sphi %s3332_s27, %s4133_s27  }
   0xa   : > { %4103 = sst [smem:[#allocation20_spill]] %s3252_s10  ;;  %p99_p0 = scmp.ne.s32.totalorder %s3240_s29, %s3236_s28 }
   0xb   : > { %p100_p1 = scmp.eq.s32.totalorder %s3252_s10, 0  ;;  %p105_p2 = scmp.ne.s32.totalorder %s3236_s28, %s3232_s27 }
   0xc   : > { %p4082_p3 = scmp.eq.s32.totalorder %s3361_s11, 0  ;;  %p2385_p5 = scmp.ge.s32.totalorder %s3252_s10, 1 }
   0xd   : > { %p101_p4 = por %p100_p1, %p99_p0  ;;  %p272_p7 = scmp.lt.s32.totalorder %s3252_s10, 3 }
   0xe   : > { %p3372_p6 = por %p4082_p3, %p105_p2  ;;  %s3254_s15 = smov [#allocation3]  }
   0xf   : > { %p3377_p8 = pnand %p2385_p5, %p272_p7  ;;  %s287_s16 = sshll.u32 %s3254_s15, 4  ;;  %s288_s16 = int_to_ptr.vmem [resolvable:$true] %s287_s16 }
  0x10   : > { %s4104_s13 = scalar_select %p3372_p6, 1, 0 }
  0x11   : > { %s4105_s14 = scalar_select %p3377_p8, 1, 0 }
  0x12   : > { %p2755_p9 = pneg %p3377_p8  ;;  %p2783_p10 = scmp.lt.s32.totalorder %s3252_s10, 2 }
  0x13   : > { %s30_s19 = sadd.s32 1, %s3248_s9  ;;  %s4108_s0 = sld [smem:[#allocation23_spill]] }
  0x14   : > { %p3386_p11 = pnand %p2755_p9, %p4082_p3  ;;  %p3390_p12 = pnand %p2783_p10, %p101_p4 }
  0x16   : > { %s4106_s17 = scalar_select %p3386_p11, 1, 0 }
  0x17   : > { %s4107_s18 = scalar_select %p3390_p12, 1, 0 }
  0x18   : > { %p4092_p0 = pneg %p3386_p11 }
  0x19   : > { %s2928_s22 = scalar_lea.hbm %s4108_s0, 128 }
  0x1a   : > { %p2929_p13 = scmp.ne.s32.totalorder %s4108_s0, %s2928_s22  ;;  %p2935_p4 = scmp.lt.u32.totalorder %s2928_s22, %s4108_s0 }
  0x1c   : > { %p2931_p1 = pnand %p4092_p0, %p2929_p13 }
  0x1e   : > { %p2932_p2 = pneg %p2931_p1 }
  0x20   : > { %p2937_p5 = pnand %p2935_p4, %p2932_p2 }
  0x22   : > { %2940 = shalt.err (!%p2937_p5)
}
  0x23   : > { %s2941_s27 = scalar_lea.vmem %s288_s16, 128  ;;  %p2949_p3 = scmp.lt.s32.totalorder %s288_s16, %s288_s16 }
  0x24   : > { %p2942_p7 = scmp.ne.s32.totalorder %s288_s16, %s2941_s27  ;;  %p2950_p6 = scmp.lt.s32.totalorder %s2941_s27, %s2941_s27 }
  0x26   : > { %p2944_p9 = pnand %p2942_p7, %p4092_p0  ;;  %p2951_p8 = por %p2950_p6, %p2949_p3 }
  0x28   : > { %p2945_p10 = pneg %p2944_p9 }
  0x2a   : > { %p2952_p12 = pnand %p2951_p8, %p2945_p10 }
  0x2c   : > { %2955 = shalt.err (!%p2952_p12)
}
  0x2d   : > { %s4086_s15 = smov 64   ;;  %s4088_s20 = smov 4  }
  0x2e   : > { %2758 = dma.hbm_to_vmem [thread:$0]  (!%p3386_p11), %s4108_s0, 128, %s288_s16, [#allocation4], %s4086_s15, %s4086_s15, %s4088_s20  }
  0x2f   : > { %p31_p3 = scmp.ge.s32.totalorder %s30_s19, 2  ;;  %s317_s23 = sand.u32 1, %s3252_s10  }
  0x30   : > { %s3422_s24 = sand.u32 1, %s3240_s29   ;;  %s3432_s27 = sshll.u32 %s3248_s9, 8 }
  0x31   : > { %s4138_s19 = smov (%p31_p3, %s30_s19), 0  ;;  %s3427_s25 = sshll.u32 %s3422_s24, 4 }
  0x32   : > { %4109 = sst [smem:[#allocation21_spill]] %s4138_s19  ;;  %s89_s26 = ssub.s32 %s3248_s9, %s4138_s19 }
  0x33   : > { %p90_p6 = scmp.eq.s32.totalorder %s89_s26, 0  ;;  %s4110_s2 = sld [smem:[#allocation24_spill]] }
  0x34   : > { %s321_s22 = scalar_lea.vmem [#allocation8], %s3427_s25  ;;  %s4111_s20 = sadd.s32 1, %s3240_s29 }
  0x35   : > { %s328_s15 = sshll.u32 %s321_s22, 4  ;;  %s3448_s26 = scalar_lea.sflag [#allocation4], %s317_s23  ;;  %s3446_s15 = int_to_ptr.vmem [resolvable:$true] %s328_s15 }
  0x36   : > { %s3444_s0 = scalar_select %p90_p6, %s3240_s29, %s4111_s20  }
  0x37   : > { %p4113_p12 = scmp.ne.s32.totalorder %s4107_s18, 0 }
  0x38   : > { %4112 = sst [smem:[#allocation22_spill]] %s3444_s0 }
  0x39   : > { %s3438_s16 = scalar_lea.hbm %s4110_s2, %s3432_s27  ;;  %p3454_p13 = pneg %p4113_p12 }
  0x3a   : > { %s2956_s19 = scalar_lea.hbm %s3438_s16, 256  ;;  %s2961_s20 = scalar_lea.hbm %s4110_s2, 512 }
  0x3b   : > { %p2957_p8 = scmp.ne.s32.totalorder %s3438_s16, %s2956_s19  ;;  %p2962_p4 = scmp.lt.u32.totalorder %s3438_s16, %s4110_s2 }
  0x3c   : > { %s4114_s12 = scalar_select %p3454_p13, 1, 0 }
  0x3d   : > { %p2959_p1 = pnand %p3454_p13, %p2957_p8  ;;  %p2963_p5 = scmp.lt.u32.totalorder %s2961_s20, %s2956_s19 }
  0x3e   : > { %p2965_p9 = scmp.lt.u32.totalorder %s2956_s19, %s3438_s16 }
  0x3f   : > { %p2960_p2 = pneg %p2959_p1  ;;  %p2964_p7 = por %p2963_p5, %p2962_p4 }
  0x41   : > { %p2966_p10 = por %p2965_p9, %p2964_p7 }
  0x43   : > { %p2967_p3 = pnand %p2966_p10, %p2960_p2 }
  0x45   : > { %2970 = shalt.err (!%p2967_p3)
}
  0x46   : > { %s2971_s23 = scalar_lea.vmem %s3446_s15, 256  ;;  %s3257_s21 = smov [#allocation8]  }
  0x47   : > { %p2972_p6 = scmp.ne.s32.totalorder %s3446_s15, %s2971_s23  ;;  %s2976_s22 = sshll.u32 %s3257_s21, 4  ;;  %s2977_s22 = int_to_ptr.vmem [resolvable:$false] %s2976_s22 }
  0x48   : > { %s2978_s0 = scalar_lea.vmem %s2977_s22, 512  ;;  %p2979_p0 = scmp.lt.s32.totalorder %s3446_s15, %s2977_s22 }
  0x49   : > { %p2974_p8 = pnand %p2972_p6, %p3454_p13  ;;  %p2980_p11 = scmp.lt.s32.totalorder %s2978_s0, %s2971_s23 }
  0x4b   : > { %p2975_p1 = pneg %p2974_p8  ;;  %p2981_p4 = por %p2980_p11, %p2979_p0 }
  0x4d   : > { %p2982_p5 = pnand %p2981_p4, %p2975_p1 }
  0x4f   : > { %2985 = shalt.err (!%p2982_p5)
}
  0x50   : > { %s4115_s29 = smov 4   ;;  %s4116_s19 = smov 64  }
  0x51   : > { %2765 = dma.hbm_to_vmem [thread:$0]  (!%p4113_p12), %s3438_s16, 256, %s3446_s15, %s3448_s26, %s4116_s19, %s4116_s19, %s4115_s29  }
  0x52   : > { %s4117_s3 = sld [smem:[#allocation25_spill]]  ;;  %s342_s23 = scalar_lea.vmem [#allocation9], %s3427_s25 }
  0x53   : > { %s349_s0 = sshll.u32 %s342_s23, 4  ;;  %s3488_s0 = int_to_ptr.vmem [resolvable:$true] %s349_s0 }
  0x58   : > { %s3485_s22 = scalar_lea.hbm %s4117_s3, %s3432_s27  ;;  %s2991_s16 = scalar_lea.hbm %s4117_s3, 512 }
  0x59   : > { %s2986_s2 = scalar_lea.hbm %s3485_s22, 256  ;;  %p2992_p7 = scmp.lt.u32.totalorder %s3485_s22, %s4117_s3 }
  0x5a   : > { %p2987_p11 = scmp.ne.s32.totalorder %s3485_s22, %s2986_s2  ;;  %p2993_p9 = scmp.lt.u32.totalorder %s2991_s16, %s2986_s2 }
  0x5b   : > { %p2995_p3 = scmp.lt.u32.totalorder %s2986_s2, %s3485_s22 }
  0x5c   : > { %p2989_p0 = pnand %p2987_p11, %p3454_p13  ;;  %p2994_p10 = por %p2993_p9, %p2992_p7 }
  0x5e   : > { %p2990_p2 = pneg %p2989_p0  ;;  %p2996_p6 = por %p2995_p3, %p2994_p10 }
  0x60   : > { %p2997_p8 = pnand %p2996_p6, %p2990_p2 }
  0x62   : > { %3000 = shalt.err (!%p2997_p8)
}
  0x63   : > { %s3001_s23 = scalar_lea.vmem %s3488_s0, 256  ;;  %s3258_s10 = smov [#allocation9]  }
  0x64   : > { %p3002_p1 = scmp.ne.s32.totalorder %s3488_s0, %s3001_s23  ;;  %s3006_s15 = sshll.u32 %s3258_s10, 4  ;;  %s3007_s15 = int_to_ptr.vmem [resolvable:$false] %s3006_s15 }
  0x65   : > { %s3008_s20 = scalar_lea.vmem %s3007_s15, 512  ;;  %p3009_p11 = scmp.lt.s32.totalorder %s3488_s0, %s3007_s15 }
  0x66   : > { %p3004_p4 = pnand %p3002_p1, %p3454_p13  ;;  %p3010_p0 = scmp.lt.s32.totalorder %s3008_s20, %s3001_s23 }
  0x68   : > { %p3005_p5 = pneg %p3004_p4  ;;  %p3011_p7 = por %p3010_p0, %p3009_p11 }
  0x6a   : > { %p3012_p9 = pnand %p3011_p7, %p3005_p5 }
  0x6c   : > { %3015 = shalt.err (!%p3012_p9)
}
  0x6d   : > { %2768 = dma.hbm_to_vmem [thread:$0]  (!%p4113_p12), %s3485_s22, 256, %s3488_s0, %s3448_s26, %s4116_s19, %s4116_s19, %s4115_s29  }
  0x6e   : > { %s3519_s21 = scalar_lea.hbm %s4077_s4, %s3432_s27  ;;  %s363_s23 = scalar_lea.vmem [#allocation10], %s3427_s25 }
  0x6f   : > { %s370_s10 = sshll.u32 %s363_s23, 4  ;;  %s2398_s15 = sshll.u32 %s3422_s24, 6  ;;  %s3522_s10 = int_to_ptr.vmem [resolvable:$true] %s370_s10 }
  0x70   : > { %s3016_s20 = scalar_lea.hbm %s3519_s21, 256  ;;  %s3021_s2 = scalar_lea.hbm %s4077_s4, 512 }
  0x71   : > { %p3017_p2 = scmp.ne.s32.totalorder %s3519_s21, %s3016_s20  ;;  %p3022_p6 = scmp.lt.u32.totalorder %s3519_s21, %s4077_s4 }
  0x72   : > { %p3023_p8 = scmp.lt.u32.totalorder %s3021_s2, %s3016_s20  ;;  %p3025_p4 = scmp.lt.u32.totalorder %s3016_s20, %s3519_s21 }
  0x73   : > { %p3019_p10 = pnand %p3017_p2, %p3454_p13 }
  0x74   : > { %p3024_p1 = por %p3023_p8, %p3022_p6 }
  0x75   : > { %p3020_p3 = pneg %p3019_p10 }
  0x76   : > { %p3026_p5 = por %p3025_p4, %p3024_p1 }
  0x78   : > { %p3027_p11 = pnand %p3026_p5, %p3020_p3 }
  0x7a   : > { %3030 = shalt.err (!%p3027_p11)
}
  0x7b   : > { %s3031_s23 = scalar_lea.vmem %s3522_s10, 256  ;;  %s3259_s22 = smov [#allocation10]  }
  0x7c   : > { %p3032_p0 = scmp.ne.s32.totalorder %s3522_s10, %s3031_s23  ;;  %s3036_s0 = sshll.u32 %s3259_s22, 4  ;;  %s3037_s0 = int_to_ptr.vmem [resolvable:$false] %s3036_s0 }
  0x7d   : > { %s3038_s3 = scalar_lea.vmem %s3037_s0, 512  ;;  %p3039_p2 = scmp.lt.s32.totalorder %s3522_s10, %s3037_s0 }
  0x7e   : > { %p3034_p7 = pnand %p3032_p0, %p3454_p13  ;;  %p3040_p10 = scmp.lt.s32.totalorder %s3038_s3, %s3031_s23 }
  0x80   : > { %p3035_p9 = pneg %p3034_p7  ;;  %p3041_p6 = por %p3040_p10, %p3039_p2 }
  0x82   : > { %p3042_p8 = pnand %p3041_p6, %p3035_p9 }
  0x84   : > { %3045 = shalt.err (!%p3042_p8)
}
  0x85   : > { %2771 = dma.hbm_to_vmem [thread:$0]  (!%p4113_p12), %s3519_s21, 256, %s3522_s10, %s3448_s26, %s4116_s19, %s4116_s19, %s4115_s29  }
  0x86   : > { %s2473_s20 = sshll.u32 %s3248_s9, 10  ;;  %s384_s22 = scalar_lea.vmem [#allocation11], %s2398_s15 }
  0x87   : > { %s3554_s23 = scalar_lea.hbm %s4078_s5, %s2473_s20  ;;  %s391_s0 = sshll.u32 %s384_s22, 4  ;;  %s3558_s0 = int_to_ptr.vmem [resolvable:$true] %s391_s0 }
  0x88   : > { %s3046_s3 = scalar_lea.hbm %s3554_s23, 1024  ;;  %s3051_s2 = scalar_lea.hbm %s4078_s5, 2048 }
  0x89   : > { %p3047_p3 = scmp.ne.s32.totalorder %s3554_s23, %s3046_s3  ;;  %p3052_p5 = scmp.lt.u32.totalorder %s3554_s23, %s4078_s5 }
  0x8a   : > { %p3053_p11 = scmp.lt.u32.totalorder %s3051_s2, %s3046_s3  ;;  %p3055_p7 = scmp.lt.u32.totalorder %s3046_s3, %s3554_s23 }
  0x8b   : > { %p3049_p1 = pnand %p3047_p3, %p3454_p13 }
  0x8c   : > { %p3054_p0 = por %p3053_p11, %p3052_p5 }
  0x8d   : > { %p3050_p4 = pneg %p3049_p1 }
  0x8e   : > { %p3056_p9 = por %p3055_p7, %p3054_p0 }
  0x90   : > { %p3057_p2 = pnand %p3056_p9, %p3050_p4 }
  0x92   : > { %3060 = shalt.err (!%p3057_p2)
}
  0x93   : > { %s3061_s15 = scalar_lea.vmem %s3558_s0, 1024  ;;  %s3260_s22 = smov [#allocation11]  }
  0x94   : > { %p3062_p10 = scmp.ne.s32.totalorder %s3558_s0, %s3061_s15  ;;  %s3066_s21 = sshll.u32 %s3260_s22, 4  ;;  %s3067_s21 = int_to_ptr.vmem [resolvable:$false] %s3066_s21 }
  0x95   : > { %s3068_s10 = scalar_lea.vmem %s3067_s21, 2048  ;;  %p3069_p3 = scmp.lt.s32.totalorder %s3558_s0, %s3067_s21 }
  0x96   : > { %p3064_p6 = pnand %p3062_p10, %p3454_p13  ;;  %p3070_p1 = scmp.lt.s32.totalorder %s3068_s10, %s3061_s15 }
  0x98   : > { %p3065_p8 = pneg %p3064_p6  ;;  %p3071_p5 = por %p3070_p1, %p3069_p3 }
  0x9a   : > { %p3072_p11 = pnand %p3071_p5, %p3065_p8 }
  0x9c   : > { %3075 = shalt.err (!%p3072_p11)
}
  0x9d   : > { %2774 = dma.hbm_to_vmem [thread:$0]  (!%p4113_p12), %s3554_s23, 1024, %s3558_s0, %s3448_s26, %s4116_s19, %s4116_s19, %s4115_s29  }
  0x9e   : > { %s3589_s20 = scalar_lea.hbm %s4079_s6, %s3432_s27  ;;  %s405_s16 = scalar_lea.vmem [#allocation12], %s3427_s25 }
  0x9f   : > { %s412_s15 = sshll.u32 %s405_s16, 4  ;;  %s3076_s22 = scalar_lea.hbm %s3589_s20, 256  ;;  %s3592_s15 = int_to_ptr.vmem [resolvable:$true] %s412_s15 }
  0xa0   : > { %p3077_p4 = scmp.ne.s32.totalorder %s3589_s20, %s3076_s22  ;;  %s3081_s19 = scalar_lea.hbm %s4079_s6, 512 }
  0xa1   : > { %p3082_p9 = scmp.lt.u32.totalorder %s3589_s20, %s4079_s6  ;;  %p3083_p2 = scmp.lt.u32.totalorder %s3081_s19, %s3076_s22 }
  0xa2   : > { %p3079_p0 = pnand %p3077_p4, %p3454_p13  ;;  %p3085_p6 = scmp.lt.u32.totalorder %s3076_s22, %s3589_s20 }
  0xa3   : > { %p3084_p10 = por %p3083_p2, %p3082_p9 }
  0xa4   : > { %p3080_p7 = pneg %p3079_p0 }
  0xa5   : > { %p3086_p8 = por %p3085_p6, %p3084_p10 }
  0xa7   : > { %p3087_p3 = pnand %p3086_p8, %p3080_p7 }
  0xa9   : > { %3090 = shalt.err (!%p3087_p3)
}
  0xaa   : > { %s3091_s25 = scalar_lea.vmem %s3592_s15, 256  ;;  %s3261_s0 = smov [#allocation12]  }
  0xab   : > { %p3092_p1 = scmp.ne.s32.totalorder %s3592_s15, %s3091_s25  ;;  %s3096_s10 = sshll.u32 %s3261_s0, 4  ;;  %s3097_s10 = int_to_ptr.vmem [resolvable:$false] %s3096_s10 }
  0xac   : > { %s3098_s3 = scalar_lea.vmem %s3097_s10, 512  ;;  %p3099_p4 = scmp.lt.s32.totalorder %s3592_s15, %s3097_s10 }
  0xad   : > { %p3094_p5 = pnand %p3092_p1, %p3454_p13  ;;  %p3100_p0 = scmp.lt.s32.totalorder %s3098_s3, %s3091_s25 }
  0xaf   : > { %p3095_p11 = pneg %p3094_p5  ;;  %p3101_p9 = por %p3100_p0, %p3099_p4 }
  0xb1   : > { %p3102_p2 = pnand %p3101_p9, %p3095_p11 }
  0xb3   : > { %3105 = shalt.err (!%p3102_p2)
}
  0xb4   : > { %s3262_s2 = smov 128   ;;  %s3263_s16 = smov 8  }
  0xb5   : > { %2777 = dma.hbm_to_vmem [thread:$0]  (!%p4113_p12), %s3589_s20, 256, %s3592_s15, %s3448_s26, %s3262_s2, %s3262_s2, %s3263_s16  }
  0xb6   : > { %s3264_s22 = smov [#allocation6]   ;;  %s3106_s23 = scalar_lea.hbm %s4074_s1, 32 }
  0xb7   : > { %s303_s21 = sshll.u32 %s3264_s22, 4  ;;  %p3107_p7 = scmp.ne.s32.totalorder %s4074_s1, %s3106_s23  ;;  %s304_s21 = int_to_ptr.vmem [resolvable:$true] %s303_s21 }
  0xb8   : > { %p4118_p10 = scmp.ne.s32.totalorder %s4106_s17, 0  ;;  %p3113_p1 = scmp.lt.u32.totalorder %s3106_s23, %s4074_s1 }
  0xba   : > { %p4119_p6 = pneg %p4118_p10 }
  0xbc   : > { %p3109_p8 = pnand %p3107_p7, %p4119_p6 }
  0xbe   : > { %p3110_p3 = pneg %p3109_p8 }
  0xc0   : > { %p3115_p5 = pnand %p3113_p1, %p3110_p3 }
  0xc2   : > { %3118 = shalt.err (!%p3115_p5)
}
  0xc3   : > { %s3119_s20 = scalar_lea.vmem %s304_s21, 32  ;;  %p4120_p4 = pmov %p4119_p6 }
  0xc4   : > { %p3120_p11 = scmp.ne.s32.totalorder %s304_s21, %s3119_s20  ;;  %p3127_p2 = scmp.lt.s32.totalorder %s304_s21, %s304_s21 }
  0xc5   : > { %p3128_p12 = scmp.lt.s32.totalorder %s3119_s20, %s3119_s20 }
  0xc6   : > { %p3122_p0 = pnand %p3120_p11, %p4120_p4 }
  0xc7   : > { %p3129_p13 = por %p3128_p12, %p3127_p2 }
  0xc8   : > { %p3123_p9 = pneg %p3122_p0 }
  0xca   : > { %p3130_p6 = pnand %p3129_p13, %p3123_p9 }
  0xcc   : > { %3133 = shalt.err (!%p3130_p6)
}
  0xcd   : > { %s3265_s15 = smov 16   ;;  %s3266_s3 = smov 1  }
  0xce   : > { %2761 = dma.hbm_to_vmem [thread:$0]  (!%p4118_p10), %s4074_s1, 32, %s304_s21, [#allocation7], %s3265_s15, %s3265_s15, %s3266_s3  }
  0xcf   : > { %s2404_s22 = sshll.u32 %s3248_s9, 4  ;;  %s425_s27 = scalar_lea.vmem [#allocation13], %s3422_s24 }
  0xd0   : > { %s3640_s23 = scalar_lea.hbm %s4080_s7, %s2404_s22  ;;  %s432_s25 = sshll.u32 %s425_s27, 4  ;;  %s433_s25 = int_to_ptr.vmem [resolvable:$true] %s432_s25 }
  0xd1   : > { %s3134_s0 = scalar_lea.hbm %s3640_s23, 16  ;;  %p4121_p13 = scmp.ne.s32.totalorder %s4114_s12, 0 }
  0xd2   : > { %p3135_p12 = scmp.ne.s32.totalorder %s3640_s23, %s3134_s0  ;;  %s3139_s10 = scalar_lea.hbm %s4080_s7, 32 }
  0xd3   : > { %p3140_p10 = scmp.lt.u32.totalorder %s3640_s23, %s4080_s7  ;;  %p3141_p3 = scmp.lt.u32.totalorder %s3139_s10, %s3134_s0 }
  0xd4   : > { %p3137_p7 = pnand %p3135_p12, %p4121_p13  ;;  %p3143_p5 = scmp.lt.u32.totalorder %s3134_s0, %s3640_s23 }
  0xd5   : > { %p3142_p1 = por %p3141_p3, %p3140_p10 }
  0xd6   : > { %p3138_p8 = pneg %p3137_p7 }
  0xd7   : > { %p3144_p11 = por %p3143_p5, %p3142_p1 }
  0xd9   : > { %p3145_p4 = pnand %p3144_p11, %p3138_p8 }
  0xdb   : > { %3148 = shalt.err (!%p3145_p4)
}
  0xdc   : > { %s3149_s24 = scalar_lea.vmem %s433_s25, 16  ;;  %s3267_s3 = smov [#allocation13]  }
  0xdd   : > { %p3150_p0 = scmp.ne.s32.totalorder %s433_s25, %s3149_s24  ;;  %s3154_s2 = sshll.u32 %s3267_s3, 4  ;;  %s3155_s2 = int_to_ptr.vmem [resolvable:$false] %s3154_s2 }
  0xde   : > { %s3156_s16 = scalar_lea.vmem %s3155_s2, 32  ;;  %p3157_p6 = scmp.lt.s32.totalorder %s433_s25, %s3155_s2 }
  0xdf   : > { %p3152_p9 = pnand %p3150_p0, %p4121_p13  ;;  %p3158_p12 = scmp.lt.s32.totalorder %s3156_s16, %s3149_s24 }
  0xe1   : > { %p3153_p2 = pneg %p3152_p9  ;;  %p3159_p7 = por %p3158_p12, %p3157_p6 }
  0xe3   : > { %p3160_p3 = pnand %p3159_p7, %p3153_p2 }
  0xe5   : > { %3163 = shalt.err (!%p3160_p3)
}
  0xe6   : > { %p4122_p10 = scmp.ne.s32.totalorder %s4107_s18, 0  ;;  %p4123_p8 = scmp.ne.s32.totalorder %s4105_s14, 0 }
  0xe7   : > { %p4124_p13 = scmp.eq.s32.totalorder (!%p4123_p8), %s3361_s11, 0 }
  0xe8   : > { %2780 = dma.hbm_to_vmem [thread:$0]  (!%p4122_p10), %s3640_s23, 16, %s433_s25, %s3448_s26  }
  0xe9   : > { %441 = sbr.rel (%p4123_p8) target bundleno = 5677 (0x162d), region = 52 }
  0xf0   : > { %3215 = dma.done.wait (%p4124_p13), [#allocation4], 128   ;;  %p4125_p1 = pmov %p4124_p13 }
  0xf2   : > { %3217 = vsyncadd (%p4125_p1), [#allocation4], 4294967168  ;;  %p4126_p5 = pmov %p4125_p1 }
  0xf3   : > { %p4127_p11 = pmov %p4125_p1 }
  0xf4   : > { %3219 = dma.done.wait (%p4126_p5), [#allocation7], 32  }
  0xf5   : > { %3221 = vsyncadd (%p4127_p11), [#allocation7], 4294967264  ;;  %s451_s18 = sand.u32 1, %s3361_s11   ;;  %s3673_s26 = sand.u32 1, %s3236_s28  }
  0xf6   : > { %s3676_s14 = sshll.u32 %s3673_s26, 4  ;;  %s452_s12 = scalar_lea.sflag [#allocation4], %s451_s18 }
  0xf7   : > { %s455_s22 = scalar_lea.vmem [#allocation8], %s3676_s14  ;;  %p4128_p4 = scmp.ne.s32.totalorder %s4104_s13, 0 }
  0xf9   : > { %3223 = dma.done.wait (%p4128_p4), %s452_s12, 2064  }
  0xfa   : > { %3225 = vsyncadd (%p4128_p4), %s452_s12, 4294965232  ;;  %s2411_s29 = sshll.u32 %s3673_s26, 6  ;;  %s464_s19 = scalar_lea.vmem [#allocation9], %s3676_s14 }
  0xfb   : > { %s3686_s23 = scalar_lea.vmem [#allocation10], %s3676_s14  ;;  %s3688_s27 = scalar_lea.vmem [#allocation11], %s2411_s29 }
  0xfc   : > { %s3691_s25 = scalar_lea.vmem [#allocation12], %s3676_s14  ;;  %s499_s0 = scalar_lea.vmem [#allocation13], %s3673_s26 }
  0xfd   : > { %p2413_p0 = scmp.ne.s32.totalorder %s3244_s30, 0 }
  0xfe   : > { %v2476_v0 = vld [vmem:[#allocation3] sm:$0xff] (!%p2413_p0)   ;;  %vm563_vm0 = vcmask (!%p2413_p0), 261120  }
  0xff   : > { %558 = sbr.rel (%p2413_p0) target bundleno = 262 (0x106), region = 88  ;;  %v2477_v1 = vunpack.c.l.bf16 (!%p2413_p0), %v2476_v0  ;;  %v2478_v2 = vunpack.c.h.bf16 (!%p2413_p0), %v2476_v0 }
 0x101   : > { %564 = vst.msk [vmem:[#allocation2] sm:$0xff] (!%p2413_p0), %vm563_vm0, %v2477_v1  ;;  %565 = vst.msk [vmem:[#allocation2 + $0x8] sm:$0xff] (!%p2413_p0), %vm563_vm0, %v2478_v2 }
 0x106 PF: > { %v3695_v3 = vld [vmem:[%s455_s22] sm:$0xff]   ;;  %v635_v4 = vlaneseq  ;;  %v3268_v5 = vmov 0.0   ;;  %v3700_v6 = vld [vmem:[%s455_s22 + $0x8] sm:$0xff]   ;;  %vm3269_vm1 = vmmov 0   ;;  %vm591_vm2 = vcmask 261120   ;;  %s3270_s13 = smov 32  }
 0x107   : > { %2547 = vmatprep.subr.bf16.mxu1 %v3268_v5  ;;  %2573 = vmatprep.subr.bf16.mxu0 %v3268_v5  ;;  %v3707_v8 = vld [vmem:[%s3691_s25] sm:$0xff]  ;;  %s3271_s17 = smov 96   ;;  %vm670_vm3 = vcmask 64512   ;;  %v3737_v26 = vld [vmem:[#allocation6] ss:$0 sm:$0xff]  ;;  %s3272_s21 = smov 64  }
 0x108   : > { %2548 = vmatpush3.bf16.msra.mxu1 %v3695_v3  ;;  %2551 = vmatprep.mubr.msk.bf16.mxu1 %vm3269_vm1, %v3268_v5  ;;  %v3704_v7 = vld [vmem:[#allocation2] sm:$0xff]  ;;  %v3709_v9 = vshrl.u32 %v635_v4, 7  ;;  %s3273_s10 = smov 88   ;;  %s3274_s20 = smov 120   ;;  %vm735_vm4 = vcmask 1043456   ;;  %vm1123_vm5 = vcmask 130048  }
 0x109   : > { %2549 = vmatprep.subr.bf16.mxu1 %v3268_v5  ;;  %2575 = vmatprep.mubr.msk.bf16.mxu0 %vm3269_vm1, %v3268_v5  ;;  %v578_v11 = vpack.c.bf16 %v3704_v7, %v3704_v7  ;;  %s3275_s15 = smov 80   ;;  %s3276_s24 = smov 112   ;;  %vm1125_vm6 = vcmask 195584  }
 0x10a   : > { %v642_v10 = vsub.s32 1, %v3709_v9  ;;  %v637_v20 = vsub.s32 0, %v3709_v9  ;;  %v651_v33 = vsub.s32 2, %v3709_v9  ;;  %s3277_s3 = smov 104   ;;  %s3278_s2 = smov 72  }
 0x10b   : > { %s3279_s16 = smov 56   ;;  %s3280_s18 = smov 48  }
 0x10c   : > { %2550 = vmatpush3.bf16.msra.mxu1 %v3700_v6  ;;  %v643_v12 = vrot.slane %v3707_v8, %v642_v10  ;;  %v3729_v21 = vrot.slane %v3707_v8, %v637_v20  ;;  %v652_v34 = vrot.slane %v3707_v8, %v651_v33  ;;  %s3281_s12 = smov 40   ;;  %s3282_s22 = smov 8  }
 0x10d   : > { %2555 = vmatprep.subr.bf16.mxu1 %v3268_v5  ;;  %s3283_s29 = smov 16   ;;  %p2465_p9 = scmp.ne.s32.totalorder %s3244_s30, 1 }
 0x10e   : > { %645 = vrot.lane.b32.xlu0 %v643_v12, %s3270_s13  ;;  %s3284_s13 = smov 24   ;;  %vm2188_vm7 = vcmask (!%p2465_p9), 257024  }
 0x10f   : > { %2552 = vmatmul.mubr.msk.bf16.vlgmr.msra.gmra.mrb[0].mxu1 %vm591_vm2, %v578_v11 }
 0x110   : > { %2557 = vmatprep.mubr.msk.bf16.mxu1 %vm3269_vm1, %v3268_v5 }
 0x180   : > { %v3723_v13 = vpop.permute.xlu0 %645 }
 0x1e2   : > { %v629_v14 = vpop.f32.mrb[0].mxu1 }
 0x1e3   : > { %v648_v15 = vadd.f32 %v3723_v13, %v629_v14  ;;  %v2553_v16 = vpop.f32.mrb[1].mxu1  ;;  %v639_v24 = vadd.f32 %v3729_v21, %v629_v14 }
 0x1e4   : > { %v632_v17 = vpop.f32.mrb[2].mxu1 }
 0x1e5   : > { %v659_v18 = vpack.c.bf16 %v648_v15, %v648_v15  ;;  %v2554_v19 = vpop.f32.mrb[3].mxu1  ;;  %v658_v25 = vpack.c.bf16 %v639_v24, %v639_v24 }
 0x1e7   : > { %668 = vrot.lane.b32.xlu0 %v659_v18, %s3271_s17 }
 0x259   : > { %v669_v22 = vpop.permute.xlu0 %668 }
 0x25a   : > { %v675_v23 = vsel %vm670_vm3, %v669_v22, 0 }
 0x25b   : > { %2556 = vmatpush3.bf16.xpose.msra.mxu1 %v675_v23 }
 0x25c   : > { %2561 = vmatprep.subr.bf16.mxu1 %v3268_v5 }
 0x262   : > { %2558 = vmatmul.mubr.msk.bf16.vlgmr.msra.gmra.mrb[4].mxu1 %vm670_vm3, %v658_v25 }
 0x263   : > { %2563 = vmatprep.mubr.msk.bf16.mxu1 %vm3269_vm1, %v3268_v5 }
 0x335   : > { %v711_v27 = vpop.f32.mrb[4].mxu1 }
 0x336   : > { %v712_v28 = vadd.f32 %v3737_v26, %v711_v27  ;;  %v2559_v29 = vpop.f32.mrb[5].mxu1 }
 0x337   : > { %v714_v30 = vpop.f32.mrb[6].mxu1 }
 0x338   : > { %v2560_v31 = vpop.f32.mrb[7].mxu1  ;;  %v717_v32 = vsel %vm670_vm3, %v712_v28, -inf }
 0x339   : > { %718 = vmax.xlane.f32.xlu1 %v717_v32 }
 0x34a   : > { %654 = vrot.lane.b32.xlu1 %v652_v34, %s3272_s21 }
 0x3c6   : > { %v719_v35 = vpop.xlane.xlu1 %718 }
 0x3c7   : > { %v720_v36 = vsub.f32 %v712_v28, %v719_v35 }
 0x3c9   : > { %v721_v37 = vmul.f32 1.442695, %v720_v36 }
 0x3ca   : > { %v3744_v38 = vpop.permute.xlu1 %654 }
 0x3cb   : > { %2887 = vpow2.f32 %v721_v37  ;;  %v657_v39 = vadd.f32 %v3744_v38, %v629_v14 }
 0x3cd   : > { %v3747_v40 = vpack.c.bf16 %v657_v39, %v657_v39 }
 0x3cf   : > { %730 = vrot.lane.b32.xlu1 %v3747_v40, %s3272_s21 }
 0x3d3   : > { %782 = vrot.lane.b32.xlu1 %v659_v18, %s3273_s10 }
 0x3d5   : > { %v2888_v41 = vpop.eup %2887 }
 0x3d6   : > { %v723_v42 = vsel %vm670_vm3, %v2888_v41, 0.0 }
 0x3d7   : > { %724 = vadd.xlane.f32.xlu0 %v723_v42  ;;  %780 = vrot.lane.b32.xlu1 %v658_v25, %s3274_s20 }
 0x3db   : > { %892 = vrot.lane.b32.xlu1 %v659_v18, %s3275_s15 }
 0x3df   : > { %890 = vrot.lane.b32.xlu1 %v658_v25, %s3276_s24 }
 0x3e3   : > { %1000 = vrot.lane.b32.xlu1 %v658_v25, %s3277_s3 }
 0x3ed   : > { %1002 = vrot.lane.b32.xlu0 %v659_v18, %s3278_s2 }
 0x441   : > { %v731_v43 = vpop.permute.xlu1 %730 }
 0x442   : > { %v737_v44 = vsel %vm735_vm4, %v731_v43, 0 }
 0x443   : > { %2562 = vmatpush3.bf16.msra.mxu1 %v737_v44 }
 0x444   : > { %2567 = vmatprep.subr.bf16.mxu1 %v3268_v5 }
 0x445   : > { %v783_v46 = vpop.permute.xlu1 %782 }
 0x446   : > { %v788_v51 = vsel %vm670_vm3, %v783_v46, 0 }
 0x449   : > { %v781_v50 = vpop.permute.xlu1 %780 }
 0x44d   : > { %v893_v52 = vpop.permute.xlu1 %892 }
 0x44e   : > { %v898_v53 = vsel %vm670_vm3, %v893_v52, 0 }
 0x451   : > { %v891_v55 = vpop.permute.xlu1 %890 }
 0x455   : > { %v1001_v57 = vpop.permute.xlu1 %1000 }
 0x464   : > { %v725_v45 = vpop.xlane.xlu0 %724 }
 0x465   : > { %2889 = vrcp.f32 %v725_v45 }
 0x468   : > { %v1003_v54 = vpop.permute.xlu0 %1002 }
 0x469   : > { %v1008_v56 = vsel %vm670_vm3, %v1003_v54, 0 }
 0x46f   : > { %v2890_v47 = vpop.eup %2889 }
 0x470   : > { %v727_v48 = vmul.f32 %v2890_v47, %v2888_v41 }
 0x472   : > { %v728_v49 = vpack.c.bf16 %v727_v48, %v727_v48 }
 0x474   : > { %2564 = vmatmul.mubr.msk.bf16.vlgmr.msra.gmra.mrb[8].mxu1 %vm670_vm3, %v728_v49 }
 0x475   : > { %2568 = vmatpush3.bf16.xpose.msra.mxu1 %v788_v51  ;;  %2569 = vmatprep.mubr.msk.bf16.mxu1 %vm3269_vm1, %v3268_v5 }
 0x476   : > { %2579 = vmatprep.subr.bf16.mxu1 %v3268_v5 }
 0x47c   : > { %2570 = vmatmul.mubr.msk.bf16.vlgmr.msra.gmra.mrb[12].mxu1 %vm670_vm3, %v781_v50 }
 0x47d   : > { %2580 = vmatpush3.bf16.xpose.msra.mxu1 %v898_v53  ;;  %2581 = vmatprep.mubr.msk.bf16.mxu1 %vm3269_vm1, %v3268_v5 }
 0x47e   : > { %2591 = vmatprep.subr.bf16.mxu1 %v3268_v5 }
 0x484   : > { %2582 = vmatmul.mubr.msk.bf16.vlgmr.msra.gmra.mrb[16].mxu1 %vm670_vm3, %v891_v55 }
 0x485   : > { %2592 = vmatpush3.bf16.xpose.msra.mxu1 %v1008_v56  ;;  %2593 = vmatprep.mubr.msk.bf16.mxu1 %vm3269_vm1, %v3268_v5 }
 0x486   : > { %2603 = vmatprep.subr.bf16.mxu1 %v3268_v5 }
 0x48c   : > { %2594 = vmatmul.mubr.msk.bf16.vlgmr.msra.gmra.mrb[20].mxu1 %vm670_vm3, %v1001_v57 }
 0x48d   : > { %2607 = vmatprep.mubr.msk.bf16.mxu1 %vm3269_vm1, %v3268_v5 }
 0x547   : > { %v3778_v58 = vpop.f32.mrb[8].mxu1 }
 0x548   : > { %v2565_v59 = vpop.f32.mrb[9].mxu1 }
 0x549   : > { %v776_v60 = vpop.f32.mrb[10].mxu1 }
 0x54a   : > { %v2566_v61 = vpop.f32.mrb[11].mxu1 }
 0x54f   : > { %v824_v62 = vpop.f32.mrb[12].mxu1 }
 0x550   : > { %v825_v63 = vadd.f32 %v3737_v26, %v824_v62  ;;  %v2571_v0 = vpop.f32.mrb[13].mxu1 }
 0x551   : > { %v827_v1 = vpop.f32.mrb[14].mxu1  ;;  %v3819_v0 = vld [vmem:[%s464_s19 + $0x8] sm:$0xff]  }
 0x552   : > { %v2572_v2 = vpop.f32.mrb[15].mxu1  ;;  %v830_v4 = vsel %vm670_vm3, %v825_v63, -inf }
 0x553   : > { %831 = vmax.xlane.f32.xlu1 %v830_v4 }
 0x557   : > { %v934_v10 = vpop.f32.mrb[16].mxu1 }
 0x558   : > { %v935_v11 = vadd.f32 %v3737_v26, %v934_v10  ;;  %v2583_v12 = vpop.f32.mrb[17].mxu1 }
 0x559   : > { %v937_v14 = vpop.f32.mrb[18].mxu1 }
 0x55a   : > { %v2584_v15 = vpop.f32.mrb[19].mxu1  ;;  %v940_v16 = vsel %vm670_vm3, %v935_v11, -inf }
 0x55b   : > { %941 = vmax.xlane.f32.xlu0 %v940_v16 }
 0x55f   : > { %v1044_v17 = vpop.f32.mrb[20].mxu1 }
 0x560   : > { %v1045_v18 = vadd.f32 %v3737_v26, %v1044_v17  ;;  %v2595_v19 = vpop.f32.mrb[21].mxu1 }
 0x561   : > { %v1047_v20 = vpop.f32.mrb[22].mxu1 }
 0x562   : > { %v2596_v22 = vpop.f32.mrb[23].mxu1  ;;  %v1050_v23 = vsel %vm670_vm3, %v1045_v18, -inf }
 0x563   : > { %1051 = vmax.xlane.f32.xlu1 %v1050_v23 }
 0x5e0   : > { %v832_v24 = vpop.xlane.xlu1 %831 }
 0x5e1   : > { %v833_v25 = vsub.f32 %v825_v63, %v832_v24  ;;  %v3813_v63 = vld [vmem:[%s464_s19] sm:$0xff]   ;;  %v1130_v24 = vsub.s32 3, %v3709_v9 }
 0x5e2   : > { %2604 = vmatpush3.bf16.msra.mxu1 %v3813_v63 }
 0x5e3   : > { %v834_v27 = vmul.f32 1.442695, %v833_v25  ;;  %2605 = vmatprep.subr.bf16.mxu1 %v3268_v5  ;;  %v3834_v25 = vrot.slane %v3707_v8, %v1130_v24 }
 0x5e5   : > { %2891 = vpow2.f32 %v834_v27 }
 0x5e6   : > { %2606 = vmatpush3.bf16.msra.mxu1 %v3819_v0 }
 0x5e7   : > { %2619 = vmatprep.subr.bf16.mxu1 %v3268_v5 }
 0x5e8   : > { %v942_v34 = vpop.xlane.xlu0 %941 }
 0x5e9   : > { %v943_v35 = vsub.f32 %v935_v11, %v942_v34 }
 0x5eb   : > { %v944_v36 = vmul.f32 1.442695, %v943_v35 }
 0x5ef   : > { %v2892_v28 = vpop.eup %2891 }
 0x5f0   : > { %v1052_v29 = vpop.xlane.xlu1 %1051  ;;  %v836_v30 = vsel %vm670_vm3, %v2892_v28, 0.0 }
 0x5f1   : > { %v1053_v31 = vsub.f32 %v1045_v18, %v1052_v29  ;;  %837 = vadd.xlane.f32.xlu1 %v836_v30 }
 0x5f3   : > { %v1054_v32 = vmul.f32 1.442695, %v1053_v31 }
 0x5f5   : > { %2893 = vpow2.f32 %v1054_v32 }
 0x5f6   : > { %2895 = vpow2.f32 %v944_v36 }
 0x5ff   : > { %v2894_v33 = vpop.eup %2893 }
 0x600   : > { %v1056_v26 = vsel %vm670_vm3, %v2894_v33, 0.0  ;;  %v2896_v37 = vpop.eup %2895 }
 0x601   : > { %1057 = vadd.xlane.f32.xlu0 %v1056_v26  ;;  %v946_v39 = vsel %vm670_vm3, %v2896_v37, 0.0 }
 0x602   : > { %842 = vrot.lane.b32.xlu1 %v3747_v40, %s3279_s16 }
 0x617   : > { %952 = vrot.lane.b32.xlu0 %v3747_v40, %s3280_s18 }
 0x626   : > { %947 = vadd.xlane.f32.xlu1 %v946_v39  ;;  %v2868_v39 = vld [vmem:[%s3686_s23 + $0x8] sm:$0xff]  }
 0x637   : > { %1062 = vrot.lane.b32.xlu1 %v3747_v40, %s3281_s12 }
 0x67e   : > { %v838_v41 = vpop.xlane.xlu1 %837 }
 0x67f   : > { %2897 = vrcp.f32 %v838_v41  ;;  %v2870_v41 = vld [vmem:[%s3688_s27 + $0x8] sm:$0xff]  }
 0x682   : > { %v843_v42 = vpop.permute.xlu1 %842 }
 0x683   : > { %v848_v43 = vsel %vm735_vm4, %v843_v42, 0  ;;  %v2871_v42 = vld [vmem:[%s3688_s27 + $0x10] sm:$0xff]  }
 0x684   : > { %2574 = vmatpush3.bf16.msra.mxu0 %v848_v43  ;;  %v2872_v43 = vld [vmem:[%s3688_s27 + $0x18] sm:$0xff]  }
 0x685   : > { %2585 = vmatprep.subr.bf16.mxu0 %v3268_v5 }
 0x689   : > { %v2898_v44 = vpop.eup %2897 }
 0x68a   : > { %v840_v45 = vmul.f32 %v2898_v44, %v2892_v28  ;;  %v2873_v44 = vld [vmem:[%s3688_s27 + $0x20] sm:$0xff]  }
 0x68c   : > { %v841_v46 = vpack.c.bf16 %v840_v45, %v840_v45  ;;  %v2874_v45 = vld [vmem:[%s3688_s27 + $0x28] sm:$0xff]  }
 0x68e   : > { %v1058_v47 = vpop.xlane.xlu0 %1057  ;;  %2576 = vmatmul.mubr.msk.bf16.vlgmr.msra.gmra.mrb[0].mxu0 %vm670_vm3, %v841_v46 }
 0x68f   : > { %2587 = vmatprep.mubr.msk.bf16.mxu0 %vm3269_vm1, %v3268_v5 }
 0x692   : > { %v953_v48 = vpop.permute.xlu0 %952 }
 0x693   : > { %v958_v40 = vsel %vm735_vm4, %v953_v48, 0 }
 0x694   : > { %2586 = vmatpush3.bf16.msra.mxu0 %v958_v40  ;;  %v1204_v40 = vsub.s32 4, %v3709_v9 }
 0x695   : > { %2597 = vmatprep.subr.bf16.mxu0 %v3268_v5 }
 0x6b3   : > { %v948_v49 = vpop.xlane.xlu1 %947 }
 0x6b4   : > { %2899 = vrcp.f32 %v948_v49  ;;  %v1209_v49 = vsub.s32 5, %v3709_v9 }
 0x6b5   : > { %2901 = vrcp.f32 %v1058_v47 }
 0x6b7   : > { %v1063_v52 = vpop.permute.xlu1 %1062 }
 0x6b8   : > { %v1068_v55 = vsel %vm735_vm4, %v1063_v52, 0 }
 0x6be   : > { %v2900_v50 = vpop.eup %2899 }
 0x6bf   : > { %v950_v51 = vmul.f32 %v2900_v50, %v2896_v37  ;;  %v2902_v54 = vpop.eup %2901  ;;  %v2867_v37 = vld [vmem:[%s3686_s23] sm:$0xff]   ;;  %v3859_v50 = vrot.slane %v3707_v8, %v1204_v40 }
 0x6c0   : > { %v1060_v56 = vmul.f32 %v2902_v54, %v2894_v33 }
 0x6c1   : > { %v951_v53 = vpack.c.bf16 %v950_v51, %v950_v51 }
 0x6c2   : > { %v1061_v57 = vpack.c.bf16 %v1060_v56, %v1060_v56 }
 0x6c3   : > { %2588 = vmatmul.mubr.msk.bf16.vlgmr.msra.gmra.mrb[4].mxu0 %vm670_vm3, %v951_v53  ;;  %v3862_v53 = vrot.slane %v3707_v8, %v1209_v49 }
 0x6c4   : > { %2598 = vmatpush3.bf16.msra.mxu0 %v1068_v55  ;;  %2599 = vmatprep.mubr.msk.bf16.mxu0 %vm3269_vm1, %v3268_v5 }
 0x6c5   : > { %2611 = vmatprep.subr.bf16.mxu0 %v3268_v5 }
 0x6cb   : > { %2600 = vmatmul.mubr.msk.bf16.vlgmr.msra.gmra.mrb[8].mxu0 %vm670_vm3, %v1061_v57  ;;  %v3874_v57 = vld [vmem:[#allocation2 + $0x8] sm:$0xff] }
 0x6cc   : > { %2615 = vmatprep.mubr.msk.bf16.mxu0 %vm3269_vm1, %v3268_v5  ;;  %2612 = vmatpush3.bf16.msra.mxu0 %v2867_v37  ;;  %v1418_v8 = vpack.c.bf16 %v3874_v57, %v3874_v57 }
 0x6cd   : > { %2613 = vmatprep.subr.bf16.mxu0 %v3268_v5 }
 0x6d0   : > { %2614 = vmatpush3.bf16.msra.mxu0 %v2868_v39 }
 0x6d1   : > { %2639 = vmatprep.subr.bf16.mxu0 %v3268_v5 }
 0x761   : > { %v884_v59 = vpop.f32.mrb[0].mxu0 }
 0x762   : > { %1111 = vrot.lane.b32.xlu1 %v884_v59, %s3282_s22  ;;  %v2577_v60 = vpop.f32.mrb[1].mxu0  ;;  %v2876_v59 = vld [vmem:[%s3688_s27 + $0x38] sm:$0xff]  }
 0x763   : > { %v887_v61 = vpop.f32.mrb[2].mxu0  ;;  %v3890_v60 = vld [vmem:[%s499_s0] ss:$0 sm:$0xff] }
 0x764   : > { %v2578_v62 = vpop.f32.mrb[3].mxu0 }
 0x796   : > { %v994_v1 = vpop.f32.mrb[4].mxu0 }
 0x797   : > { %1115 = vrot.lane.b32.xlu0 %v994_v1, %s3283_s29  ;;  %v2589_v2 = vpop.f32.mrb[5].mxu0 }
 0x798   : > { %v997_v4 = vpop.f32.mrb[6].mxu0 }
 0x799   : > { %v2590_v10 = vpop.f32.mrb[7].mxu0 }
 0x79e   : > { %v1104_v11 = vpop.f32.mrb[8].mxu0 }
 0x79f   : > { %1119 = vrot.lane.b32.xlu1 %v1104_v11, %s3284_s13  ;;  %v2601_v12 = vpop.f32.mrb[9].mxu0 }
 0x7a0   : > { %v1107_v14 = vpop.f32.mrb[10].mxu0 }
 0x7a1   : > { %v2602_v15 = vpop.f32.mrb[11].mxu0 }
 0x7d4   : > { %v1112_v16 = vpop.permute.xlu1 %1111 }
 0x7d5   : > { %v1122_v18 = vsel %vm670_vm3, %v3778_v58, %v1112_v16 }
 0x809   : > { %v1116_v17 = vpop.permute.xlu0 %1115 }
 0x80a   : > { %v1124_v19 = vsel %vm1123_vm5, %v1122_v18, %v1116_v17 }
 0x811   : > { %v1120_v20 = vpop.permute.xlu1 %1119 }
 0x812   : > { %v1126_v22 = vsel %vm1125_vm6, %v1124_v19, %v1120_v20 }
 0x813   : > { %v1127_v23 = vpack.c.bf16 %v1126_v22, %v1126_v22 }
 0x815   : > { %2608 = vmatmul.mubr.msk.bf16.vlgmr.msra.gmra.mrb[24].mxu1 %vm591_vm2, %v1127_v23 }
 0x816   : > { %2635 = vmatprep.mubr.msk.bf16.mxu1 %vm3269_vm1, %v3268_v5 }
 0x8e8   : > { %v1181_v27 = vpop.f32.mrb[24].mxu1 }
 0x8e9   : > { %v1182_v58 = vadd.f32 %v1181_v27, %v3834_v25  ;;  %v2609_v28 = vpop.f32.mrb[25].mxu1  ;;  %v3909_v27 = vld [vmem:[#allocation6 + $0x1] ss:$0 sm:$0xff] }
 0x8ea   : > { %v1184_v29 = vpop.f32.mrb[26].mxu1 }
 0x8eb   : > { %v2610_v30 = vpop.f32.mrb[27].mxu1  ;;  %v1187_v31 = vadd.f32 %v1182_v58, %v3704_v7  ;;  %v2869_v7 = vld [vmem:[%s3688_s27] sm:$0xff]  }
 0x8ec   : > { %2620 = vmatpush3.bf16.msra.mxu1 %v2869_v7 }
 0x8ed   : > { %v1188_v32 = vsel %vm591_vm2, %v1187_v31, 0.0  ;;  %2621 = vmatprep.subr.bf16.mxu1 %v3268_v5 }
 0x8ee   : > { %1189 = vadd.xlane.f32.xlu0 %v1188_v32 }
 0x8f0   : > { %2622 = vmatpush3.bf16.msra.mxu1 %v2870_v41 }
 0x8f1   : > { %2623 = vmatprep.subr.bf16.mxu1 %v3268_v5 }
 0x8f4   : > { %2624 = vmatpush3.bf16.msra.mxu1 %v2871_v42 }
 0x8f5   : > { %2625 = vmatprep.subr.bf16.mxu1 %v3268_v5 }
 0x8f8   : > { %2626 = vmatpush3.bf16.msra.mxu1 %v2872_v43 }
 0x8f9   : > { %2627 = vmatprep.subr.bf16.mxu1 %v3268_v5 }
 0x8fc   : > { %2628 = vmatpush3.bf16.msra.mxu1 %v2873_v44 }
 0x8fd   : > { %2629 = vmatprep.subr.bf16.mxu1 %v3268_v5 }
 0x900   : > { %2630 = vmatpush3.bf16.msra.mxu1 %v2874_v45 }
 0x901   : > { %2631 = vmatprep.subr.bf16.mxu1 %v3268_v5 }
 0x97b   : > { %v1190_v33 = vpop.xlane.xlu0 %1189 }
 0x97c   : > { %v1192_v26 = vmul.f32 0.03125, %v1190_v33 }
 0x97e   : > { %v1193_v34 = vsub.f32 %v1187_v31, %v1192_v26 }
 0x980   : > { %v1194_v35 = vmul.f32 %v1193_v34, %v1193_v34 }
 0x982   : > { %v1195_v36 = vsel %vm591_vm2, %v1194_v35, 0.0 }
 0x983   : > { %1196 = vadd.xlane.f32.xlu1 %v1195_v36 }
 0xa10   : > { %v1197_v46 = vpop.xlane.xlu1 %1196 }
 0xa11   : > { %v1198_v47 = vmul.f32 0.03125, %v1197_v46 }
 0xa13   : > { %v1199_v48 = vadd.f32 1e-05, %v1198_v47 }
 0xa15   : > { %2903 = vrsqrt.f32 %v1199_v48 }
 0xa1f   : > { %v2904_v51 = vpop.eup %2903 }
 0xa20   : > { %v1201_v52 = vmul.f32 %v2904_v51, %v1193_v34 }
 0xa22   : > { %v1206_v54 = vmul.f32 %v3859_v50, %v1201_v52 }
 0xa24   : > { %v3866_v55 = vadd.f32 %v3862_v53, %v1206_v54 }
 0xa26   : > { %v1212_v56 = vpack.c.bf16 %v3866_v55, %v3866_v55 }
 0xa28   : > { %2616 = vmatmul.mubr.msk.bf16.vlgmr.msra.gmra.mrb[12].mxu0 %vm591_vm2, %v1212_v56 }
 0xa29   : > { %2640 = vmatpush3.bf16.msra.mxu0 %v3695_v3  ;;  %2643 = vmatprep.mubr.msk.bf16.mxu0 %vm3269_vm1, %v3268_v5  ;;  %v2875_v3 = vld [vmem:[%s3688_s27 + $0x30] sm:$0xff]  }
 0xa2a   : > { %2641 = vmatprep.subr.bf16.mxu0 %v3268_v5  ;;  %2632 = vmatpush3.bf16.msra.mxu1 %v2875_v3 }
 0xa2b   : > { %2633 = vmatprep.subr.bf16.mxu1 %v3268_v5 }
 0xa2d   : > { %2642 = vmatpush3.bf16.msra.mxu0 %v3700_v6 }
 0xa2e   : > { %2647 = vmatprep.subr.bf16.mxu0 %v3268_v5  ;;  %2634 = vmatpush3.bf16.msra.mxu1 %v2876_v59 }
 0xa2f   : > { %2665 = vmatprep.subr.bf16.mxu1 %v3268_v5 }
 0xa30   : > { %2644 = vmatmul.mubr.msk.bf16.vlgmr.msra.gmra.mrb[16].mxu0 %vm591_vm2, %v1418_v8 }
 0xa31   : > { %2649 = vmatprep.mubr.msk.bf16.mxu0 %vm3269_vm1, %v3268_v5 }
 0xafb   : > { %v1289_v61 = vpop.f32.mrb[12].mxu0 }
 0xafc   : > { %v1290_v6 = vadd.f32 %v3890_v60, %v1289_v61  ;;  %v2617_v62 = vpop.f32.mrb[13].mxu0 }
 0xafd   : > { %v1292_v1 = vpop.f32.mrb[14].mxu0 }
 0xafe   : > { %v1295_v2 = vmax.f32 %v1290_v6, 0.0  ;;  %v2618_v4 = vpop.f32.mrb[15].mxu0 }
 0xb00   : > { %v1296_v10 = vpack.c.bf16 %v1295_v2, %v1295_v2 }
 0xb02   : > { %2636 = vmatmul.mubr.bf16.vlgmr.msra.gmra.mrb[28].mxu1 %v1296_v10 }
 0xb03   : > { %v1456_v11 = vpop.f32.mrb[16].mxu0  ;;  %2667 = vmatprep.mubr.msk.bf16.mxu1 %vm3269_vm1, %v3268_v5 }
 0xb04   : > { %v1463_v12 = vadd.f32 %v1456_v11, %v3723_v13  ;;  %v2645_v14 = vpop.f32.mrb[17].mxu0  ;;  %v1462_v18 = vadd.f32 %v1456_v11, %v3729_v21  ;;  %v1464_v37 = vadd.f32 %v1456_v11, %v3744_v38 }
 0xb05   : > { %v1459_v15 = vpop.f32.mrb[18].mxu0 }
 0xb06   : > { %v1466_v16 = vpack.c.bf16 %v1463_v12, %v1463_v12  ;;  %v2646_v17 = vpop.f32.mrb[19].mxu0  ;;  %v1465_v19 = vpack.c.bf16 %v1462_v18, %v1462_v18  ;;  %v3915_v39 = vpack.c.bf16 %v1464_v37, %v1464_v37 }
 0xb08   : > { %1475 = vrot.lane.b32.xlu0 %v1466_v16, %s3271_s17 }
 0xb0c   : > { %1587 = vrot.lane.b32.xlu0 %v1466_v16, %s3273_s10 }
 0xb10   : > { %1585 = vrot.lane.b32.xlu0 %v1465_v19, %s3274_s20 }
 0xb14   : > { %1697 = vrot.lane.b32.xlu0 %v1466_v16, %s3275_s15 }
 0xb18   : > { %1807 = vrot.lane.b32.xlu0 %v1466_v16, %s3278_s2 }
 0xb7a   : > { %v1476_v20 = vpop.permute.xlu0 %1475 }
 0xb7b   : > { %v1481_v13 = vsel %vm670_vm3, %v1476_v20, 0 }
 0xb7c   : > { %2648 = vmatpush3.bf16.xpose.msra.mxu0 %v1481_v13 }
 0xb7d   : > { %2653 = vmatprep.subr.bf16.mxu0 %v3268_v5 }
 0xb7e   : > { %v1588_v43 = vpop.permute.xlu0 %1587 }
 0xb7f   : > { %v1593_v47 = vsel %vm670_vm3, %v1588_v43, 0 }
 0xb82   : > { %v1586_v46 = vpop.permute.xlu0 %1585 }
 0xb83   : > { %2650 = vmatmul.mubr.msk.bf16.vlgmr.msra.gmra.mrb[20].mxu0 %vm670_vm3, %v1465_v19 }
 0xb84   : > { %2655 = vmatprep.mubr.msk.bf16.mxu0 %vm3269_vm1, %v3268_v5 }
 0xb86   : > { %v1698_v48 = vpop.permute.xlu0 %1697 }
 0xb87   : > { %v1703_v40 = vsel %vm670_vm3, %v1698_v48, 0 }
 0xb8a   : > { %v1808_v49 = vpop.permute.xlu0 %1807 }
 0xb8b   : > { %v1813_v52 = vsel %vm670_vm3, %v1808_v49, 0 }
 0xbd5   : > { %v3907_v21 = vpop.f32.mrb[28].mxu1 }
 0xbd6   : > { %v2637_v22 = vpop.f32.mrb[29].mxu1 }
 0xbd7   : > { %v1386_v23 = vpop.f32.mrb[30].mxu1 }
 0xbd8   : > { %v2638_v24 = vpop.f32.mrb[31].mxu1 }
 0xc56   : > { %v1517_v58 = vpop.f32.mrb[20].mxu0 }
 0xc57   : > { %v1518_v28 = vadd.f32 %v3909_v27, %v1517_v58  ;;  %v2651_v29 = vpop.f32.mrb[21].mxu0 }
 0xc58   : > { %v1520_v30 = vpop.f32.mrb[22].mxu0 }
 0xc59   : > { %v2652_v31 = vpop.f32.mrb[23].mxu0  ;;  %v1523_v32 = vsel %vm670_vm3, %v1518_v28, -inf }
 0xc5a   : > { %1524 = vmax.xlane.f32.xlu1 %v1523_v32 }
 0xce7   : > { %v1525_v33 = vpop.xlane.xlu1 %1524 }
 0xce8   : > { %v1526_v26 = vsub.f32 %v1518_v28, %v1525_v33 }
 0xcea   : > { %v1527_v34 = vmul.f32 1.442695, %v1526_v26 }
 0xcec   : > { %2905 = vpow2.f32 %v1527_v34 }
 0xcf6   : > { %v2906_v35 = vpop.eup %2905 }
 0xcf7   : > { %v1529_v36 = vsel %vm670_vm3, %v2906_v35, 0.0 }
 0xcf8   : > { %1530 = vadd.xlane.f32.xlu1 %v1529_v36 }
 0xd09   : > { %1536 = vrot.lane.b32.xlu1 %v3915_v39, %s3272_s21 }
 0xd0d   : > { %1695 = vrot.lane.b32.xlu1 %v1465_v19, %s3276_s24 }
 0xd11   : > { %1805 = vrot.lane.b32.xlu1 %v1465_v19, %s3277_s3 }
 0xd85   : > { %v1531_v7 = vpop.xlane.xlu1 %1530 }
 0xd86   : > { %2907 = vrcp.f32 %v1531_v7 }
 0xd89   : > { %v1537_v41 = vpop.permute.xlu1 %1536 }
 0xd8a   : > { %v1542_v42 = vsel %vm735_vm4, %v1537_v41, 0 }
 0xd8b   : > { %2654 = vmatpush3.bf16.msra.mxu0 %v1542_v42 }
 0xd8c   : > { %2659 = vmatprep.subr.bf16.mxu0 %v3268_v5 }
 0xd8d   : > { %v1696_v51 = vpop.permute.xlu1 %1695 }
 0xd90   : > { %v2908_v44 = vpop.eup %2907 }
 0xd91   : > { %v1533_v38 = vmul.f32 %v2908_v44, %v2906_v35  ;;  %v1806_v54 = vpop.permute.xlu1 %1805 }
 0xd93   : > { %v1534_v45 = vpack.c.bf16 %v1533_v38, %v1533_v38 }
 0xd95   : > { %2656 = vmatmul.mubr.msk.bf16.vlgmr.msra.gmra.mrb[24].mxu0 %vm670_vm3, %v1534_v45 }
 0xd96   : > { %2660 = vmatpush3.bf16.xpose.msra.mxu0 %v1593_v47  ;;  %2661 = vmatprep.mubr.msk.bf16.mxu0 %vm3269_vm1, %v3268_v5 }
 0xd97   : > { %2671 = vmatprep.subr.bf16.mxu0 %v3268_v5 }
 0xd9d   : > { %2662 = vmatmul.mubr.msk.bf16.vlgmr.msra.gmra.mrb[28].mxu0 %vm670_vm3, %v1586_v46 }
 0xd9e   : > { %2672 = vmatpush3.bf16.xpose.msra.mxu0 %v1703_v40  ;;  %2673 = vmatprep.mubr.msk.bf16.mxu0 %vm3269_vm1, %v3268_v5 }
 0xd9f   : > { %2683 = vmatprep.subr.bf16.mxu0 %v3268_v5 }
 0xda5   : > { %2674 = vmatmul.mubr.msk.bf16.vlgmr.msra.gmra.mrb[32].mxu0 %vm670_vm3, %v1696_v51 }
 0xda6   : > { %2684 = vmatpush3.bf16.xpose.msra.mxu0 %v1813_v52  ;;  %2685 = vmatprep.mubr.msk.bf16.mxu0 %vm3269_vm1, %v3268_v5 }
 0xda7   : > { %2695 = vmatprep.subr.bf16.mxu0 %v3268_v5 }
 0xdad   : > { %2686 = vmatmul.mubr.msk.bf16.vlgmr.msra.gmra.mrb[36].mxu0 %vm670_vm3, %v1806_v54 }
 0xdae   : > { %2696 = vmatpush3.bf16.msra.mxu0 %v3813_v63  ;;  %2699 = vmatprep.mubr.msk.bf16.mxu0 %vm3269_vm1, %v3268_v5 }
 0xdaf   : > { %2697 = vmatprep.subr.bf16.mxu0 %v3268_v5 }
 0xdb2   : > { %2698 = vmatpush3.bf16.msra.mxu0 %v3819_v0 }
 0xdb3   : > { %2711 = vmatprep.subr.bf16.mxu0 %v3268_v5 }
 0xe68   : > { %v3945_v56 = vpop.f32.mrb[24].mxu0 }
 0xe69   : > { %v2657_v8 = vpop.f32.mrb[25].mxu0 }
 0xe6a   : > { %v1581_v3 = vpop.f32.mrb[26].mxu0 }
 0xe6b   : > { %v2658_v59 = vpop.f32.mrb[27].mxu0 }
 0xe70   : > { %v1629_v61 = vpop.f32.mrb[28].mxu0 }
 0xe71   : > { %v1630_v6 = vadd.f32 %v3909_v27, %v1629_v61  ;;  %v2663_v62 = vpop.f32.mrb[29].mxu0 }
 0xe72   : > { %v1632_v1 = vpop.f32.mrb[30].mxu0 }
 0xe73   : > { %v2664_v63 = vpop.f32.mrb[31].mxu0  ;;  %v1635_v2 = vsel %vm670_vm3, %v1630_v6, -inf }
 0xe74   : > { %1636 = vmax.xlane.f32.xlu0 %v1635_v2 }
 0xe78   : > { %v1739_v4 = vpop.f32.mrb[32].mxu0 }
 0xe79   : > { %v1740_v10 = vadd.f32 %v3909_v27, %v1739_v4  ;;  %v2675_v0 = vpop.f32.mrb[33].mxu0 }
 0xe7a   : > { %v1742_v11 = vpop.f32.mrb[34].mxu0 }
 0xe7b   : > { %v2676_v12 = vpop.f32.mrb[35].mxu0  ;;  %v1745_v14 = vsel %vm670_vm3, %v1740_v10, -inf }
 0xe7c   : > { %1746 = vmax.xlane.f32.xlu1 %v1745_v14 }
 0xe80   : > { %v1849_v15 = vpop.f32.mrb[36].mxu0 }
 0xe81   : > { %v1850_v16 = vadd.f32 %v3909_v27, %v1849_v15  ;;  %v2687_v17 = vpop.f32.mrb[37].mxu0 }
 0xe82   : > { %v1852_v18 = vpop.f32.mrb[38].mxu0 }
 0xe83   : > { %v2688_v19 = vpop.f32.mrb[39].mxu0  ;;  %v1855_v20 = vsel %vm670_vm3, %v1850_v16, -inf }
 0xe84   : > { %1856 = vmax.xlane.f32.xlu0 %v1855_v20  ;;  %v1299_v19 = vsub.s32 6, %v3709_v9  ;;  %v2927_v20 = vld [vmem:[%s3691_s25] sm:$0xff] }
 0xe8d   : > { %1647 = vrot.lane.b32.xlu1 %v3915_v39, %s3279_s16 }
 0xf01   : > { %v1637_v13 = vpop.xlane.xlu0 %1636 }
 0xf02   : > { %v1638_v22 = vsub.f32 %v1630_v6, %v1637_v13  ;;  %v3989_v13 = vrot.slane %v2927_v20, %v1299_v19 }
 0xf04   : > { %v1639_v23 = vmul.f32 1.442695, %v1638_v22 }
 0xf06   : > { %2909 = vpow2.f32 %v1639_v23 }
 0xf09   : > { %v1747_v24 = vpop.xlane.xlu1 %1746 }
 0xf0a   : > { %v1748_v58 = vsub.f32 %v1740_v10, %v1747_v24 }
 0xf0c   : > { %v1749_v28 = vmul.f32 1.442695, %v1748_v58 }
 0xf0d   : > { %v1648_v29 = vpop.permute.xlu1 %1647 }
 0xf0e   : > { %2911 = vpow2.f32 %v1749_v28  ;;  %v1653_v27 = vsel %vm735_vm4, %v1648_v29, 0 }
 0xf0f   : > { %2666 = vmatpush3.bf16.msra.mxu1 %v1653_v27 }
 0xf10   : > { %v2910_v30 = vpop.eup %2909  ;;  %2677 = vmatprep.subr.bf16.mxu1 %v3268_v5 }
 0xf11   : > { %v1857_v31 = vpop.xlane.xlu0 %1856  ;;  %v1641_v32 = vsel %vm670_vm3, %v2910_v30, 0.0 }
 0xf12   : > { %v1858_v33 = vsub.f32 %v1850_v16, %v1857_v31  ;;  %1642 = vadd.xlane.f32.xlu0 %v1641_v32 }
 0xf14   : > { %v1859_v26 = vmul.f32 1.442695, %v1858_v33 }
 0xf16   : > { %2913 = vpow2.f32 %v1859_v26 }
 0xf18   : > { %v2912_v34 = vpop.eup %2911 }
 0xf19   : > { %v1751_v35 = vsel %vm670_vm3, %v2912_v34, 0.0 }
 0xf1a   : > { %1752 = vadd.xlane.f32.xlu1 %v1751_v35 }
 0xf20   : > { %v2914_v36 = vpop.eup %2913 }
 0xf21   : > { %v1861_v37 = vsel %vm670_vm3, %v2914_v36, 0.0 }
 0xf22   : > { %1862 = vadd.xlane.f32.xlu0 %v1861_v37  ;;  %v2877_v37 = vld [vmem:[%s3686_s23] sm:$0xff]  }
 0xf2b   : > { %1867 = vrot.lane.b32.xlu1 %v3915_v39, %s3281_s12 }
 0xf38   : > { %1757 = vrot.lane.b32.xlu0 %v3915_v39, %s3280_s18 }
 0xf9f   : > { %v1643_v7 = vpop.xlane.xlu0 %1642 }
 0xfa0   : > { %2915 = vrcp.f32 %v1643_v7  ;;  %v2878_v7 = vld [vmem:[%s3686_s23 + $0x8] sm:$0xff]  }
 0xfa7   : > { %v1753_v41 = vpop.xlane.xlu1 %1752 }
 0xfa8   : > { %2917 = vrcp.f32 %v1753_v41  ;;  %v2879_v41 = vld [vmem:[%s3688_s27] sm:$0xff]  }
 0xfaa   : > { %v2916_v42 = vpop.eup %2915 }
 0xfab   : > { %v1645_v43 = vmul.f32 %v2916_v42, %v2910_v30  ;;  %v1868_v39 = vpop.permute.xlu1 %1867  ;;  %v2880_v42 = vld [vmem:[%s3688_s27 + $0x8] sm:$0xff]  }
 0xfac   : > { %v1873_v49 = vsel %vm735_vm4, %v1868_v39, 0 }
 0xfad   : > { %v1646_v44 = vpack.c.bf16 %v1645_v43, %v1645_v43  ;;  %v2881_v43 = vld [vmem:[%s3688_s27 + $0x10] sm:$0xff]  }
 0xfaf   : > { %2668 = vmatmul.mubr.msk.bf16.vlgmr.msra.gmra.mrb[32].mxu1 %vm670_vm3, %v1646_v44  ;;  %v1863_v38 = vpop.xlane.xlu0 %1862  ;;  %v2882_v44 = vld [vmem:[%s3688_s27 + $0x18] sm:$0xff]  }
 0xfb0   : > { %2919 = vrcp.f32 %v1863_v38  ;;  %2679 = vmatprep.mubr.msk.bf16.mxu1 %vm3269_vm1, %v3268_v5  ;;  %v2883_v38 = vld [vmem:[%s3688_s27 + $0x20] sm:$0xff]  }
 0xfb2   : > { %v2918_v45 = vpop.eup %2917 }
 0xfb3   : > { %v1755_v46 = vmul.f32 %v2918_v45, %v2912_v34  ;;  %v1758_v47 = vpop.permute.xlu0 %1757  ;;  %v2884_v45 = vld [vmem:[%s3688_s27 + $0x28] sm:$0xff]  }
 0xfb4   : > { %v1763_v48 = vsel %vm735_vm4, %v1758_v47, 0 }
 0xfb5   : > { %2678 = vmatpush3.bf16.msra.mxu1 %v1763_v48  ;;  %v1756_v40 = vpack.c.bf16 %v1755_v46, %v1755_v46 }
 0xfb6   : > { %2689 = vmatprep.subr.bf16.mxu1 %v3268_v5 }
 0xfb8   : > { %2680 = vmatmul.mubr.msk.bf16.vlgmr.msra.gmra.mrb[36].mxu1 %vm670_vm3, %v1756_v40 }
 0xfb9   : > { %2690 = vmatpush3.bf16.msra.mxu1 %v1873_v49  ;;  %2691 = vmatprep.mubr.msk.bf16.mxu1 %vm3269_vm1, %v3268_v5 }
 0xfba   : > { %v2920_v51 = vpop.eup %2919  ;;  %2703 = vmatprep.subr.bf16.mxu1 %v3268_v5 }
 0xfbb   : > { %v1865_v52 = vmul.f32 %v2920_v51, %v2914_v36  ;;  %v1405_v51 = vsub.s32 7, %v3709_v9  ;;  %v2886_v9 = vld [vmem:[%s3688_s27 + $0x38] sm:$0xff]  }
 0xfbd   : > { %v1866_v54 = vpack.c.bf16 %v1865_v52, %v1865_v52 }
 0xfc0   : > { %2692 = vmatmul.mubr.msk.bf16.vlgmr.msra.gmra.mrb[40].mxu1 %vm670_vm3, %v1866_v54 }
 0xfc1   : > { %2707 = vmatprep.mubr.msk.bf16.mxu1 %vm3269_vm1, %v3268_v5  ;;  %2704 = vmatpush3.bf16.msra.mxu1 %v2877_v37 }
 0xfc2   : > { %2705 = vmatprep.subr.bf16.mxu1 %v3268_v5 }
 0xfc5   : > { %2706 = vmatpush3.bf16.msra.mxu1 %v2878_v7 }
0x1082   : > { %v1689_v8 = vpop.f32.mrb[32].mxu1 }
0x1083   : > { %1916 = vrot.lane.b32.xlu1 %v1689_v8, %s3282_s22  ;;  %v2669_v3 = vpop.f32.mrb[33].mxu1 }
0x1084   : > { %v1692_v59 = vpop.f32.mrb[34].mxu1  ;;  %v1406_v3 = vrot.slane %v2927_v20, %v1405_v51 }
0x1085   : > { %v2670_v61 = vpop.f32.mrb[35].mxu1 }
0x108b   : > { %v1799_v6 = vpop.f32.mrb[36].mxu1 }
0x108c   : > { %1920 = vrot.lane.b32.xlu0 %v1799_v6, %s3283_s29  ;;  %v2681_v62 = vpop.f32.mrb[37].mxu1 }
0x108d   : > { %v1802_v1 = vpop.f32.mrb[38].mxu1  ;;  %v2441_v62 = vld [vmem:[%s3691_s25 + $0x8] ss:$0 sm:$0xff] }
0x108e   : > { %v2682_v63 = vpop.f32.mrb[39].mxu1 }
0x1093   : > { %v1909_v2 = vpop.f32.mrb[40].mxu1 }
0x1094   : > { %1924 = vrot.lane.b32.xlu1 %v1909_v2, %s3284_s13  ;;  %v2693_v4 = vpop.f32.mrb[41].mxu1 }
0x1095   : > { %v1912_v10 = vpop.f32.mrb[42].mxu1  ;;  %v2885_v4 = vld [vmem:[%s3688_s27 + $0x30] sm:$0xff]  }
0x1096   : > { %v2694_v0 = vpop.f32.mrb[43].mxu1 }
0x10f5   : > { %v1917_v11 = vpop.permute.xlu1 %1916 }
0x10f6   : > { %v1927_v14 = vsel %vm670_vm3, %v3945_v56, %v1917_v11  ;;  %v1384_v56 = vadd.f32 %v3907_v21, %v3989_v13 }
0x10f8   : > { %v1389_v30 = vadd.f32 %v1384_v56, %v3866_v55 }
0x10fa   : > { %v1390_v31 = vsel %vm591_vm2, %v1389_v30, 0.0 }
0x10fe   : > { %v1921_v12 = vpop.permute.xlu0 %1920 }
0x10ff   : > { %v1928_v15 = vsel %vm1123_vm5, %v1927_v14, %v1921_v12 }
0x1106   : > { %v1925_v16 = vpop.permute.xlu1 %1924 }
0x1107   : > { %v1929_v17 = vsel %vm1125_vm6, %v1928_v15, %v1925_v16 }
0x1108   : > { %v1930_v18 = vpack.c.bf16 %v1929_v17, %v1929_v17 }
0x110a   : > { %2700 = vmatmul.mubr.msk.bf16.vlgmr.msra.gmra.mrb[40].mxu0 %vm591_vm2, %v1930_v18 }
0x110b   : > { %2727 = vmatprep.mubr.msk.bf16.mxu0 %vm3269_vm1, %v3268_v5  ;;  %2712 = vmatpush3.bf16.msra.mxu0 %v2879_v41 }
0x110c   : > { %2713 = vmatprep.subr.bf16.mxu0 %v3268_v5 }
0x110f   : > { %2714 = vmatpush3.bf16.msra.mxu0 %v2880_v42 }
0x1110   : > { %2715 = vmatprep.subr.bf16.mxu0 %v3268_v5 }
0x1113   : > { %2716 = vmatpush3.bf16.msra.mxu0 %v2881_v43 }
0x1114   : > { %2717 = vmatprep.subr.bf16.mxu0 %v3268_v5 }
0x1117   : > { %2718 = vmatpush3.bf16.msra.mxu0 %v2882_v44 }
0x1118   : > { %2719 = vmatprep.subr.bf16.mxu0 %v3268_v5 }
0x111b   : > { %2720 = vmatpush3.bf16.msra.mxu0 %v2883_v38 }
0x111c   : > { %2721 = vmatprep.subr.bf16.mxu0 %v3268_v5 }
0x111f   : > { %2722 = vmatpush3.bf16.msra.mxu0 %v2884_v45 }
0x1120   : > { %2723 = vmatprep.subr.bf16.mxu0 %v3268_v5 }
0x1123   : > { %2724 = vmatpush3.bf16.msra.mxu0 %v2885_v4 }
0x1124   : > { %2725 = vmatprep.subr.bf16.mxu0 %v3268_v5 }
0x1127   : > { %2726 = vmatpush3.bf16.msra.mxu0 %v2886_v9 }
0x11dd   : > { %v1968_v22 = vpop.f32.mrb[40].mxu0 }
0x11de   : > { %v1969_v23 = vadd.f32 %v1968_v22, %v3834_v25  ;;  %v2701_v24 = vpop.f32.mrb[41].mxu0 }
0x11df   : > { %v1971_v58 = vpop.f32.mrb[42].mxu0 }
0x11e0   : > { %v2702_v28 = vpop.f32.mrb[43].mxu0  ;;  %v1974_v29 = vadd.f32 %v1969_v23, %v3874_v57 }
0x11e2   : > { %v1975_v27 = vsel %vm591_vm2, %v1974_v29, 0.0 }
0x11e3   : > { %1976 = vadd.xlane.f32.xlu0 %v1975_v27 }
0x11e7   : > { %1391 = vadd.xlane.f32.xlu0 %v1390_v31 }
0x1270   : > { %v1977_v32 = vpop.xlane.xlu0 %1976 }
0x1271   : > { %v1978_v33 = vmul.f32 0.03125, %v1977_v32 }
0x1273   : > { %v1979_v21 = vsub.f32 %v1974_v29, %v1978_v33 }
0x1274   : > { %v1392_v25 = vpop.xlane.xlu0 %1391 }
0x1275   : > { %v1393_v26 = vmul.f32 0.03125, %v1392_v25  ;;  %v1980_v34 = vmul.f32 %v1979_v21, %v1979_v21 }
0x1277   : > { %v1394_v35 = vsub.f32 %v1389_v30, %v1393_v26  ;;  %v1981_v57 = vsel %vm591_vm2, %v1980_v34, 0.0 }
0x1278   : > { %1982 = vadd.xlane.f32.xlu1 %v1981_v57 }
0x1279   : > { %v1395_v55 = vmul.f32 %v1394_v35, %v1394_v35 }
0x127b   : > { %v1396_v36 = vsel %vm591_vm2, %v1395_v55, 0.0 }
0x127c   : > { %1397 = vadd.xlane.f32.xlu1 %v1396_v36 }
0x1305   : > { %v1983_v46 = vpop.xlane.xlu1 %1982 }
0x1306   : > { %v1984_v47 = vmul.f32 0.03125, %v1983_v46 }
0x1308   : > { %v1985_v48 = vadd.f32 1e-05, %v1984_v47 }
0x1309   : > { %v1398_v39 = vpop.xlane.xlu1 %1397 }
0x130a   : > { %2921 = vrsqrt.f32 %v1985_v48  ;;  %v1399_v40 = vmul.f32 0.03125, %v1398_v39 }
0x130c   : > { %v1400_v49 = vadd.f32 1e-05, %v1399_v40 }
0x130e   : > { %2923 = vrsqrt.f32 %v1400_v49 }
0x1314   : > { %v2922_v52 = vpop.eup %2921 }
0x1315   : > { %v1987_v54 = vmul.f32 %v2922_v52, %v1979_v21 }
0x1317   : > { %v1988_v8 = vmul.f32 %v1987_v54, %v3859_v50 }
0x1318   : > { %v2924_v59 = vpop.eup %2923 }
0x1319   : > { %v1402_v61 = vmul.f32 %v2924_v59, %v1394_v35  ;;  %v1989_v6 = vadd.f32 %v1988_v8, %v3862_v53 }
0x131b   : > { %v1407_v1 = vmul.f32 %v1406_v3, %v1402_v61  ;;  %v1990_v63 = vpack.c.bf16 %v1989_v6, %v1989_v6 }
0x131d   : > { %v1412_v2 = vadd.f32 %v2441_v62, %v1407_v1  ;;  %2708 = vmatmul.mubr.msk.bf16.vlgmr.msra.gmra.mrb[44].mxu1 %vm591_vm2, %v1990_v63 }
0x131f   : > { %1413 = vst.msk [vmem:[#allocation2] sm:$0xff] %vm591_vm2, %v1412_v2 }
0x1326   : > { %v2184_v32 = vld [vmem:[#allocation2] sm:$0xff] (!%p2465_p9) }
0x1327   : > { %v2186_v21 = vpack.c.bf16 (!%p2465_p9), %v2184_v32, %v2184_v32 }
0x1329   : > { %2189 = vst.msk [vmem:[#allocation14] sm:$0xf] (!%p2465_p9), %vm2188_vm7, %v2186_v21 }
0x13f0   : > { %v2067_v50 = vpop.f32.mrb[44].mxu1 }
0x13f1   : > { %v2068_v10 = vadd.f32 %v3890_v60, %v2067_v50  ;;  %v2709_v0 = vpop.f32.mrb[45].mxu1 }
0x13f2   : > { %v2070_v11 = vpop.f32.mrb[46].mxu1 }
0x13f3   : > { %v2073_v53 = vmax.f32 %v2068_v10, 0.0  ;;  %v2710_v12 = vpop.f32.mrb[47].mxu1 }
0x13f5   : > { %v2074_v14 = vpack.c.bf16 %v2073_v53, %v2073_v53 }
0x13f7   : > { %2728 = vmatmul.mubr.bf16.vlgmr.msra.gmra.mrb[44].mxu0 %v2074_v14 }
0x14ca   : > { %v2157_v15 = vpop.f32.mrb[44].mxu0 }
0x14cb   : > { %v2158_v16 = vadd.f32 %v2157_v15, %v3989_v13  ;;  %v2729_v17 = vpop.f32.mrb[45].mxu0 }
0x14cc   : > { %v2160_v18 = vpop.f32.mrb[46].mxu0 }
0x14cd   : > { %v2730_v19 = vpop.f32.mrb[47].mxu0  ;;  %v2163_v20 = vadd.f32 %v2158_v16, %v1989_v6 }
0x14cf   : > { %v2164_v5 = vsel %vm591_vm2, %v2163_v20, 0.0 }
0x14d0   : > { %2165 = vadd.xlane.f32.xlu0 %v2164_v5 }
0x155d   : > { %v2166_v22 = vpop.xlane.xlu0 %2165 }
0x155e   : > { %v2167_v56 = vmul.f32 0.03125, %v2166_v22 }
0x1560   : > { %v2168_v23 = vsub.f32 %v2163_v20, %v2167_v56 }
0x1562   : > { %v2169_v60 = vmul.f32 %v2168_v23, %v2168_v23 }
0x1564   : > { %v2170_v24 = vsel %vm591_vm2, %v2169_v60, 0.0 }
0x1565   : > { %2171 = vadd.xlane.f32.xlu0 %v2170_v24 }
0x15f2   : > { %v2172_v58 = vpop.xlane.xlu0 %2171 }
0x15f3   : > { %v2173_v28 = vmul.f32 0.03125, %v2172_v58 }
0x15f5   : > { %v2174_v29 = vadd.f32 1e-05, %v2173_v28 }
0x15f7   : > { %2925 = vrsqrt.f32 %v2174_v29 }
0x1601   : > { %v2926_v27 = vpop.eup %2925 }
0x1602   : > { %v2176_v13 = vmul.f32 %v2926_v27, %v2168_v23  ;;  %2183 = sbr.rel (%p2465_p9) target bundleno = 5651 (0x1613), region = 92 }
0x1604   : > { %v2177_v30 = vmul.f32 %v2176_v13, %v1406_v3 }
0x1606   : > { %v2178_v31 = vadd.f32 %v2441_v62, %v2177_v30 }
0x1608   : > { %2179 = vst.msk [vmem:[#allocation2 + $0x8] sm:$0xff] %vm591_vm2, %v2178_v31 }
0x160f   : > { %v2185_v33 = vld [vmem:[#allocation2 + $0x8] sm:$0xff] }
0x1610   : > { %v2187_v25 = vpack.c.bf16 %v2185_v33, %v2185_v33 }
0x1612   : > { %2190 = vst.msk [vmem:[#allocation14 + $0x4] sm:$0xf] %vm2188_vm7, %v2187_v25 }
0x1613 PF: > { %p2786_p2 = scmp.eq.s32.totalorder %s3361_s11, 1  ;;  %s3285_s26 = smov [#allocation14]  }
0x1614   : > { %s2200_s14 = sshll.u32 %s3285_s26, 4  ;;  %s2201_s14 = int_to_ptr.vmem [resolvable:$true] %s2200_s14 }
0x1615   : > { %s3164_s19 = scalar_lea.vmem %s2201_s14, 128  ;;  %p3171_p3 = scmp.lt.s32.totalorder %s2201_s14, %s2201_s14 }
0x1616   : > { %p3165_p6 = scmp.ne.s32.totalorder %s2201_s14, %s3164_s19  ;;  %p3172_p10 = scmp.lt.s32.totalorder %s3164_s19, %s3164_s19 }
0x1618   : > { %p3166_p12 = pnand %p3165_p6, %p2786_p2  ;;  %p3173_p8 = por %p3172_p10, %p3171_p3 }
0x161a   : > { %p3167_p7 = pneg %p3166_p12 }
0x161c   : > { %p3174_p13 = pnand %p3173_p8, %p3167_p7 }
0x161e   : > { %3177 = shalt.err (!%p3174_p13)
}
0x161f   : > { %s3178_s27 = scalar_lea.hbm %s4081_s8, 128 }
0x1620   : > { %p3179_p1 = scmp.ne.s32.totalorder %s4081_s8, %s3178_s27  ;;  %p3184_p4 = scmp.lt.u32.totalorder %s3178_s27, %s4081_s8 }
0x1622   : > { %p3180_p5 = pnand %p3179_p1, %p2786_p2 }
0x1624   : > { %p3181_p11 = pneg %p3180_p5 }
0x1626   : > { %p3186_p0 = pnand %p3184_p4, %p3181_p11 }
0x1628   : > { %3189 = shalt.err (!%p3186_p0)
}
0x1629   : > { %s3286_s20 = smov 4  }
0x162a   : > { %2752 = dma.vmem_to_hbm [thread:$0]  (%p2786_p2), %s2201_s14, 128, %s4081_s8, [#allocation5], %s3272_s21, %s3272_s21, %s3286_s20  }
0x162b   : > { %3227 = dma.done.wait (%p2786_p2), [#allocation5], 128  }
0x162c   : > { %3229 = vsyncadd (%p2786_p2), [#allocation5], 4294967168 }
0x162d PF: > { %s4129_s3 = sld [smem:[#allocation20_spill]]  ;;  %s4130_s2 = sld [smem:[#allocation19_spill]] }
0x162e   : > { %s4131_s29 = sld [smem:[#allocation22_spill]]  ;;  %s4132_s16 = sld [smem:[#allocation21_spill]] }
0x162f   : > { %s4133_s27 = smov %s3236_s28  ;;  %s4135_s30 = smov %s3248_s9 }
0x1633   : > { %s21_s10 = sadd.s32 1, %s4129_s3   ;;  %s4134_s28 = smov %s4130_s2 }
0x1634   : > { %p18_p9 = scmp.ge.s32.totalorder %s21_s10, 4   ;;  %s4136_s9 = smov %s4132_s16 }
0x1636   :  { %20 = sbr.rel (!%p18_p9) target bundleno = 9 (0x9), region = 164 }
0x163d   :  { %2216 = vsyncpa [#allocation4], 1 }
0x163e   :  { %2218 = vsyncpa [#allocation4 + $0x1], 1 }
0x163f   :  { %2219 = vsyncpa [#allocation7], 1 }
0x1640   :  { %2220 = vsyncpa [#allocation5], 1 }
0x1641   :  { %2222 = vsyncpa [#allocation5 + $0x1], 1 }

</bundles_post_ra>
